<compile_context>
chip_gen: v5e
topology: v5e:2x2
jax: 0.10.0
libtpu: 0.0.40
codegen_flags: <defaults>
</compile_context>

<pallas_src>
import functools

import jax
import jax.numpy as jnp
from jax import lax
from jax.experimental import pallas as pl
from jax.experimental.pallas import tpu as pltpu


# --------------------------------------------------------------------------
# Generation-aware VMEM budget (leave ~25% headroom).
# --------------------------------------------------------------------------
def _vmem_budget_bytes():
    try:
        cap = int(pltpu.get_tpu_info().vmem_capacity_bytes)
    except Exception:
        cap = 64 * 1024 * 1024          # conservative fallback (v7x-sized)
    return max(32 * 1024 * 1024, (cap * 3) // 4)


_VMEM_LIMIT = _vmem_budget_bytes()


def _sigmoid(x):
    return 1.0 / (1.0 + jnp.exp(-x))


# --------------------------------------------------------------------------
# Pallas kernel 1: fused coattention block (one batch element per grid step)
#   L = passage @ question^T, two masked softmaxes, S_Q, S_D, C_D.
# --------------------------------------------------------------------------
def _coattn_kernel(plen_ref, qlen_ref, pas_ref, ques_ref,
                   sd_ref, sq_ref, cd_ref, *, P, Q, D):
    b = pl.program_id(0)
    pas = pas_ref[0]                      # (P, D) bf16
    ques = ques_ref[0]                    # (Q, D) bf16

    # L = passage @ question^T  (bf16 operands, f32 accumulation on the MXU)
    L = jnp.einsum('pd,qd->pq', pas, ques,
                   preferred_element_type=jnp.float32)                # (P, Q) f32

    # Length masks built in-kernel from scalar-prefetched lengths (SMEM).
    p_idx = lax.broadcasted_iota(jnp.int32, (P, Q), 0)
    q_idx = lax.broadcasted_iota(jnp.int32, (P, Q), 1)
    p_valid = p_idx < plen_ref[b]
    q_valid = q_idx < qlen_ref[b]
    Lm = jnp.where(p_valid & q_valid, L, L - jnp.float32(1e9))

    # AQ: softmax over the passage axis (axis 0), zero invalid question columns.
    aq = jnp.exp(Lm - jnp.max(Lm, axis=0, keepdims=True))
    aq = aq * pl.reciprocal(jnp.sum(aq, axis=0, keepdims=True), approx=True)
    aq = jnp.where(q_valid, aq, 0.0)

    # AD^T: softmax over the question axis (axis 1), zero invalid passage rows.
    ad = jnp.exp(Lm - jnp.max(Lm, axis=1, keepdims=True))
    ad = ad * pl.reciprocal(jnp.sum(ad, axis=1, keepdims=True), approx=True)
    ad = jnp.where(p_valid, ad, 0.0)

    aq_bf = aq.astype(jnp.bfloat16)
    ad_bf = ad.astype(jnp.bfloat16)

    # S_Q = AQ^T @ passage -> (Q, D)
    s_q = jnp.einsum('pq,pd->qd', aq_bf, pas,
                     preferred_element_type=jnp.float32)
    s_q_bf = s_q.astype(jnp.bfloat16)

    if D % 128 == 0:
        # Lane-aligned: fuse [S_D | C_D] = AD^T @ [question | S_Q] into one matmul.
        rhs = jnp.concatenate([ques, s_q_bf], axis=-1)                 # (Q, 2D)
        sdcd = jnp.einsum('pq,qe->pe', ad_bf, rhs,
                          preferred_element_type=jnp.float32)
        s_d = sdcd[:, :D]
        c_d = sdcd[:, D:]
    else:
        # Lane-misaligned D: avoid the cross-lane concat, use two matmuls.
        s_d = jnp.einsum('pq,qd->pd', ad_bf, ques,
                         preferred_element_type=jnp.float32)
        c_d = jnp.einsum('pq,qd->pd', ad_bf, s_q_bf,
                         preferred_element_type=jnp.float32)

    sd_ref[0] = s_d.astype(sd_ref.dtype)
    sq_ref[0] = s_q_bf
    cd_ref[0] = c_d.astype(cd_ref.dtype)


def coattn_pallas(passage_bf, question_bf, plens, qlens):
    """passage_bf/question_bf are bf16 (B, P|Q, D). Returns bf16 S_D, S_Q, C_D."""
    B, P, D = passage_bf.shape
    Q = question_bf.shape[1]

    im = lambda b, plen_ref, qlen_ref: (b, 0, 0)
    s_d, s_q, c_d = pl.pallas_call(
        functools.partial(_coattn_kernel, P=P, Q=Q, D=D),
        out_shape=(jax.ShapeDtypeStruct((B, P, D), jnp.bfloat16),
                   jax.ShapeDtypeStruct((B, Q, D), jnp.bfloat16),
                   jax.ShapeDtypeStruct((B, P, D), jnp.bfloat16)),
        grid_spec=pltpu.PrefetchScalarGridSpec(
            num_scalar_prefetch=2,
            grid=(B,),
            in_specs=[pl.BlockSpec((1, P, D), im),
                      pl.BlockSpec((1, Q, D), im)],
            out_specs=(pl.BlockSpec((1, P, D), im),
                       pl.BlockSpec((1, Q, D), im),
                       pl.BlockSpec((1, P, D), im)),
        ),
        compiler_params=pltpu.CompilerParams(
            dimension_semantics=("parallel",),
            vmem_limit_bytes=_VMEM_LIMIT),
    )(plens.astype(jnp.int32), qlens.astype(jnp.int32), passage_bf, question_bf)
    return s_d, s_q, c_d


# --------------------------------------------------------------------------
# Pallas kernel 2: tiled dense (x @ W + b) — nn.Linear and LSTM input gates.
#   bf16 operands, f32 accumulation, (M, K)-tiled grid, K reduction via scratch.
# --------------------------------------------------------------------------
def linear_pallas(x, w_bf16, b_f32, out_dtype=jnp.float32):
    # x: (M, K); w_bf16: (K, N) bf16 (pre-transposed at init); b_f32: (N,)
    M, K = x.shape
    N = w_bf16.shape[1]
    x_bf = x.astype(jnp.bfloat16)                 # no-op when producer is bf16
    b2 = b_f32.reshape(1, N).astype(jnp.float32)
    out_bytes = jnp.dtype(out_dtype).itemsize

    # Tile sizes derived from the per-generation VMEM budget.
    tm = 1024 if _VMEM_LIMIT > 64 * 1024 * 1024 else 512
    mp8 = -(-M // 8) * 8
    tm = min(tm, mp8)

    def tiles_bytes(tm_, tk_):
        # double-buffered x/w/out blocks + f32 accumulator
        return (2 * (tm_ * tk_ * 2 + tk_ * N * 2 + tm_ * N * out_bytes)
                + tm_ * N * 4)

    tk = K
    while tiles_bytes(tm, tk) > _VMEM_LIMIT * 0.6 and tk > 512:
        tk = max(512, ((tk // 2) // 128) * 128)
    while tiles_bytes(tm, tk) > _VMEM_LIMIT * 0.6 and tm > 128:
        tm = max(128, tm // 2)

    Mp = -(-M // tm) * tm
    Kp = -(-K // tk) * tk
    if Mp != M or Kp != K:
        x_bf = jnp.pad(x_bf, ((0, Mp - M), (0, Kp - K)))
    w = w_bf16 if Kp == K else jnp.pad(w_bf16, ((0, Kp - K), (0, 0)))
    nm, nk = Mp // tm, Kp // tk

    def kernel(x_ref, w_ref, b_ref, o_ref, acc_ref):
        @pl.when(pl.program_id(1) == 0)
        def _():
            acc_ref[...] = jnp.zeros_like(acc_ref)
        acc_ref[...] += jnp.dot(x_ref[...], w_ref[...],
                                preferred_element_type=jnp.float32)
        @pl.when(pl.program_id(1) == nk - 1)
        def _():
            o_ref[...] = (acc_ref[...] + b_ref[...]).astype(o_ref.dtype)

    out = pl.pallas_call(
        kernel,
        out_shape=jax.ShapeDtypeStruct((Mp, N), out_dtype),
        grid=(nm, nk),
        in_specs=[pl.BlockSpec((tm, tk), lambda i, k: (i, k)),
                  pl.BlockSpec((tk, N), lambda i, k: (k, 0)),
                  pl.BlockSpec((1, N), lambda i, k: (0, 0))],
        out_specs=pl.BlockSpec((tm, N), lambda i, k: (i, 0)),
        scratch_shapes=[pltpu.VMEM((tm, N), jnp.float32)],
        compiler_params=pltpu.CompilerParams(
            dimension_semantics=("parallel", "arbitrary"),
            vmem_limit_bytes=_VMEM_LIMIT),
    )(x_bf, w, b2)
    return out[:M] if Mp != M else out


# --------------------------------------------------------------------------
# Pallas kernel 3: bidirectional LSTM recurrence, gridded over time.
#   xp (precomputed x @ W_ih + b) streamed via BlockSpec, w_hh resident in VMEM,
#   h/c persist in VMEM scratch; forward + backward directions in one call
#   (backward stream uses time-reversed index maps).
# --------------------------------------------------------------------------
def bilstm_layer_pallas(xp_f, xp_b, mask_t, w_hh_f, w_hh_b, hidden):
    # xp_f/xp_b: (T, B, 4H) bf16 ; mask_t: (T, B, 1) f32 ; w_hh_*: (H, 4H) bf16
    T, B, G = xp_f.shape
    H = hidden

    def kernel(xpf_ref, xpb_ref, mf_ref, mb_ref, whf_ref, whb_ref,
               yf_ref, yb_ref, hf, cf, hb, cb):
        t = pl.program_id(0)

        @pl.when(t == 0)
        def _():
            hf[...] = jnp.zeros_like(hf)
            cf[...] = jnp.zeros_like(cf)
            hb[...] = jnp.zeros_like(hb)
            cb[...] = jnp.zeros_like(cb)

        def step(xp, m, w_ref, h_ref, c_ref, y_ref):
            h = h_ref[...]
            c = c_ref[...]
            gates = xp.astype(jnp.float32) + jnp.dot(
                h.astype(jnp.bfloat16), w_ref[...],
                preferred_element_type=jnp.float32)                   # (B, 4H)
            i_g = _sigmoid(gates[:, 0:H])
            f_g = _sigmoid(gates[:, H:2 * H])
            g_g = jnp.tanh(gates[:, 2 * H:3 * H])
            o_g = _sigmoid(gates[:, 3 * H:4 * H])
            c_new = f_g * c + i_g * g_g
            h_new = o_g * jnp.tanh(c_new)
            h2 = m * h_new + (1.0 - m) * h      # hold state at padded steps
            c2 = m * c_new + (1.0 - m) * c
            h_ref[...] = h2
            c_ref[...] = c2
            y_ref[0] = (h2 * m).astype(y_ref.dtype)   # zero at padded steps

        step(xpf_ref[0], mf_ref[0], whf_ref, hf, cf, yf_ref)
        step(xpb_ref[0], mb_ref[0], whb_ref, hb, cb, yb_ref)

    yf, yb = pl.pallas_call(
        kernel,
        out_shape=(jax.ShapeDtypeStruct((T, B, H), jnp.bfloat16),
                   jax.ShapeDtypeStruct((T, B, H), jnp.bfloat16)),
        grid=(T,),
        in_specs=[pl.BlockSpec((1, B, G), lambda t: (t, 0, 0)),           # xp fwd
                  pl.BlockSpec((1, B, G), lambda t: (T - 1 - t, 0, 0)),   # xp bwd
                  pl.BlockSpec((1, B, 1), lambda t: (t, 0, 0)),           # mask fwd
                  pl.BlockSpec((1, B, 1), lambda t: (T - 1 - t, 0, 0)),   # mask bwd
                  pl.BlockSpec((H, 4 * H), lambda t: (0, 0)),             # w_hh fwd
                  pl.BlockSpec((H, 4 * H), lambda t: (0, 0))],            # w_hh bwd
        out_specs=(pl.BlockSpec((1, B, H), lambda t: (t, 0, 0)),
                   pl.BlockSpec((1, B, H), lambda t: (T - 1 - t, 0, 0))),
        scratch_shapes=[pltpu.VMEM((B, H), jnp.float32)] * 4,
        compiler_params=pltpu.CompilerParams(
            dimension_semantics=("arbitrary",),
            vmem_limit_bytes=_VMEM_LIMIT),
    )(xp_f, xp_b, mask_t, mask_t, w_hh_f, w_hh_b)
    return yf, yb


def bilstm_multi(xs, lens_list, layer_params, hidden):
    """Run the same multi-layer bi-LSTM over several padded sequences.

    All sequences share layer parameters; the fwd+bwd input projections of all
    sequences are merged into ONE tiled Pallas matmul per layer, then the
    recurrence runs in the time-gridded Pallas LSTM kernel.
    """
    B = xs[0].shape[0]
    Ts = [x.shape[1] for x in xs]
    H = hidden
    masks_t = [
        jnp.transpose(
            (jnp.arange(T)[None, :] < lens[:, None]).astype(jnp.float32))[:, :, None]
        for T, lens in zip(Ts, lens_list)                               # (T, B, 1)
    ]
    hs = list(xs)
    for layer in layer_params:
        in_dim = hs[0].shape[-1]
        flat = jnp.concatenate(
            [h.reshape(B * T, in_dim) for h, T in zip(hs, Ts)], axis=0)
        proj = linear_pallas(flat, layer['w_ih'], layer['b_ih'],
                             out_dtype=jnp.bfloat16)                    # (., 8H)
        outs = []
        off = 0
        for T, m_t in zip(Ts, masks_t):
            p = proj[off:off + B * T].reshape(B, T, 8 * H)
            off += B * T
            p_t = jnp.transpose(p, (1, 0, 2))                           # (T, B, 8H)
            yf, yb = bilstm_layer_pallas(p_t[..., :4 * H], p_t[..., 4 * H:],
                                         m_t, layer['w_hh_f'], layer['w_hh_b'], H)
            out = jnp.concatenate([yf, yb], axis=-1)                    # (T, B, 2H)
            outs.append(jnp.transpose(out, (1, 0, 2)))                  # (B, T, 2H)
        hs = outs
    return hs


# --------------------------------------------------------------------------
# Parameter init (deterministic, synthetic).  Weights are stored in the layout
# the kernels consume: pre-transposed, fwd|bwd-merged, pre-cast to bf16.
# --------------------------------------------------------------------------
def init_lstm_params(key, num_layers, input_size, hidden):
    layers = []
    for layer in range(num_layers):
        in_dim = input_size if layer == 0 else 2 * hidden
        key, k1, k2, k3, k4, k5, k6, k7, k8 = jax.random.split(key, 9)
        w_ih_f = 0.1 * jax.random.normal(k1, (4 * hidden, in_dim), jnp.float32)
        w_ih_b = 0.1 * jax.random.normal(k2, (4 * hidden, in_dim), jnp.float32)
        w_hh_f = 0.1 * jax.random.normal(k3, (4 * hidden, hidden), jnp.float32)
        w_hh_b = 0.1 * jax.random.normal(k4, (4 * hidden, hidden), jnp.float32)
        b_f = 0.1 * (jax.random.normal(k5, (4 * hidden,), jnp.float32)
                     + jax.random.normal(k6, (4 * hidden,), jnp.float32))
        b_b = 0.1 * (jax.random.normal(k7, (4 * hidden,), jnp.float32)
                     + jax.random.normal(k8, (4 * hidden,), jnp.float32))
        layers.append(dict(
            # merged [fwd | bwd] input projection, pre-transposed, bf16
            w_ih=jnp.concatenate([w_ih_f.T, w_ih_b.T], axis=1).astype(jnp.bfloat16),
            b_ih=jnp.concatenate([b_f, b_b], axis=0),
            # recurrent weights pre-transposed (H, 4H), bf16 (f32 MXU accumulation)
            w_hh_f=w_hh_f.T.astype(jnp.bfloat16),
            w_hh_b=w_hh_b.T.astype(jnp.bfloat16),
        ))
    return layers, key


def init_params(key, hidden_dim, num_layers):
    D = 2 * hidden_dim
    lstm1, key = init_lstm_params(key, num_layers, 2 * hidden_dim, hidden_dim)
    lstm2, key = init_lstm_params(key, num_layers, 12 * hidden_dim, hidden_dim)
    key, k1, k2, k3, k4 = jax.random.split(key, 5)
    return dict(
        lstm1=lstm1,
        lstm2=lstm2,
        # mlp weights stored pre-transposed (in, out) and pre-cast to bf16
        mlp1_w=(0.1 * jax.random.normal(k1, (D, D), jnp.float32)).T.astype(jnp.bfloat16),
        mlp1_b=0.1 * jax.random.normal(k2, (D,), jnp.float32),
        mlp2_w=(0.1 * jax.random.normal(k3, (D, D), jnp.float32)).T.astype(jnp.bfloat16),
        mlp2_b=0.1 * jax.random.normal(k4, (D,), jnp.float32),
    )


# --------------------------------------------------------------------------
# Full forward pass (inference path: istraining=False)
# TODO(synk): dropout and BatchNorm1d training branches are not implemented
#             (module is evaluated with istraining=False).
# --------------------------------------------------------------------------
@functools.partial(jax.jit, static_argnames=('hidden_dim',))
def coattention_forward(params, question, question_lens, passage, passage_lens,
                        hidden_dim):
    B, P, _ = passage.shape
    Q = question.shape[1]
    H = hidden_dim
    D = 2 * H

    # Single up-front cast; all kernels consume/produce bf16 until the final mlp2.
    pas_bf = passage.astype(jnp.bfloat16)
    ques_bf = question.astype(jnp.bfloat16)

    # ---- stage 1 coattention (fused Pallas kernel) ----
    S1D, S1Q, C1D = coattn_pallas(pas_bf, ques_bf, passage_lens, question_lens)

    # ---- bi-LSTM #1 over passage- and question-side summaries (shared weights,
    #      one merged input-projection matmul per layer, Pallas recurrence) ----
    E2D, E2Q = bilstm_multi([S1D, S1Q], [passage_lens, question_lens],
                            params['lstm1'], H)

    # ---- mlp1 applied to both streams with a single tiled matmul ----
    flat = jnp.concatenate([E2D.reshape(B * P, D), E2Q.reshape(B * Q, D)], axis=0)
    proj = linear_pallas(flat, params['mlp1_w'], params['mlp1_b'],
                         out_dtype=jnp.bfloat16)
    E2D = proj[:B * P].reshape(B, P, D)
    E2Q = proj[B * P:].reshape(B, Q, D)

    # ---- stage 2 coattention (same kernel) ----
    S2D, _S2Q, C2D = coattn_pallas(E2D, E2Q, passage_lens, question_lens)

    # ---- concat + bi-LSTM #2 + mlp2 ----
    U = jnp.concatenate([pas_bf, E2D, S1D, S2D, C1D, C2D], axis=2)   # (B, P, 12H)
    (U,) = bilstm_multi([U], [passage_lens], params['lstm2'], H)     # (B, P, 2H)
    U = linear_pallas(U.reshape(B * P, D), params['mlp2_w'], params['mlp2_b'],
                      out_dtype=jnp.float32).reshape(B, P, D)
    return jnp.transpose(U, (0, 2, 1))                               # (B, 2H, P)


if __name__ == "__main__":
    key = jax.random.PRNGKey(0)

    B = 2            # batch_size
    H = 16           # hidden_dim
    D = 2 * H
    P = 8            # padded passage length (== max(passage_lens))
    Q = 8            # padded question length (== max(question_lens))
    NUM_LAYERS = 2

    key, kq, kp, kparam = jax.random.split(key, 4)
    question = jax.random.normal(kq, (B, Q, D), jnp.float32)
    passage = jax.random.normal(kp, (B, P, D), jnp.float32)
    question_lens = jnp.array([Q, Q - 3], dtype=jnp.int32)
    passage_lens = jnp.array([P, P - 2], dtype=jnp.int32)

    params = init_params(kparam, H, NUM_LAYERS)

    out = coattention_forward(params, question, question_lens,
                              passage, passage_lens, hidden_dim=H)
    out = jax.block_until_ready(out)
    assert out.shape == (B, D, P), out.shape
    assert bool(jnp.all(jnp.isfinite(out)))
    print("KERNEL_OK")
</pallas_src>

<mosaic_0001>
module attributes {stable_mosaic.version = 11 : i64} {
  func.func @kernel(%arg0: i32, %arg1: i32, %arg2: memref<32x32xbf16, #tpu.memory_space<vmem>>, %arg3: memref<32x128xbf16, #tpu.memory_space<vmem>>, %arg4: memref<1x128xf32, #tpu.memory_space<vmem>>, %arg5: memref<32x128xbf16, #tpu.memory_space<vmem>>, %arg6: memref<32x128xf32, #tpu.memory_space<vmem>>) attributes {dimension_semantics = [#tpu.dimension_semantics<parallel>, #tpu.dimension_semantics<arbitrary>], iteration_bounds = array<i64: 1, 1>, scalar_prefetch = 0 : i64, scratch_operands = 1 : i64, tpu.core_type = #tpu.core_type<tc>, window_params = [{transform_indices = @transform_0, window_bounds = array<i64: 32, 32>}, {transform_indices = @transform_1, window_bounds = array<i64: 32, 128>}, {pipeline_mode = #tpu.pipeline_mode<synchronous>, transform_indices = @transform_2, window_bounds = array<i64: 1, 128>}, {transform_indices = @transform_3, window_bounds = array<i64: 32, 128>}]} {
    %c0_i32 = arith.constant 0 : i32
    %0 = arith.cmpi eq, %arg1, %c0_i32 : i32
    %1 = arith.extui %0 : i1 to i32
    %c0_i32_0 = arith.constant 0 : i32
    %2 = arith.cmpi ne, %1, %c0_i32_0 : i32
    scf.if %2 {
      %cst_10 = arith.constant 0.000000e+00 : f32
      %12 = vector.broadcast %cst_10 : f32 to vector<32x128xf32>
      %c0_11 = arith.constant 0 : index
      %c0_12 = arith.constant 0 : index
      %13 = vector.load %arg6[%c0_11, %c0_12] : memref<32x128xf32, #tpu.memory_space<vmem>>, vector<32x128xf32>
      tpu.vector_store %arg6[%c0_11, %c0_12], %12 {strides = array<i32>} : memref<32x128xf32, #tpu.memory_space<vmem>>, vector<32x128xf32>,
    } else {
    }
    %c0 = arith.constant 0 : index
    %c0_1 = arith.constant 0 : index
    %3 = vector.load %arg6[%c0, %c0_1] : memref<32x128xf32, #tpu.memory_space<vmem>>, vector<32x128xf32>
    %c0_2 = arith.constant 0 : index
    %c0_3 = arith.constant 0 : index
    %4 = vector.load %arg2[%c0_2, %c0_3] : memref<32x32xbf16, #tpu.memory_space<vmem>>, vector<32x32xbf16>
    %c0_4 = arith.constant 0 : index
    %c0_5 = arith.constant 0 : index
    %5 = vector.load %arg3[%c0_4, %c0_5] : memref<32x128xbf16, #tpu.memory_space<vmem>>, vector<32x128xbf16>
    %cst = arith.constant dense<0.000000e+00> : vector<32x128xf32>
    %6 = tpu.matmul %4, %5, %cst {dimension_numbers = #tpu.dot_dimension_numbers<[1], [0], [0], [1], [0, 0, 1, 1], [], []>} : vector<32x32xbf16>, vector<32x128xbf16>, vector<32x128xf32> -> vector<32x128xf32>
    %7 = arith.addf %3, %6 : vector<32x128xf32>
    %c0_6 = arith.constant 0 : index
    %c0_7 = arith.constant 0 : index
    %8 = vector.load %arg6[%c0_6, %c0_7] : memref<32x128xf32, #tpu.memory_space<vmem>>, vector<32x128xf32>
    tpu.vector_store %arg6[%c0_6, %c0_7], %7 {strides = array<i32>} : memref<32x128xf32, #tpu.memory_space<vmem>>, vector<32x128xf32>,
    %c0_i32_8 = arith.constant 0 : i32
    %9 = arith.cmpi eq, %arg1, %c0_i32_8 : i32
    %10 = arith.extui %9 : i1 to i32
    %c0_i32_9 = arith.constant 0 : i32
    %11 = arith.cmpi ne, %10, %c0_i32_9 : i32
    scf.if %11 {
      %c0_10 = arith.constant 0 : index
      %c0_11 = arith.constant 0 : index
      %12 = vector.load %arg6[%c0_10, %c0_11] : memref<32x128xf32, #tpu.memory_space<vmem>>, vector<32x128xf32>
      %c0_12 = arith.constant 0 : index
      %c0_13 = arith.constant 0 : index
      %13 = vector.load %arg4[%c0_12, %c0_13] : memref<1x128xf32, #tpu.memory_space<vmem>>, vector<1x128xf32>
      %14 = vector.broadcast %13 : vector<1x128xf32> to vector<32x128xf32>
      %15 = arith.addf %12, %14 : vector<32x128xf32>
      %16 = arith.truncf %15 : vector<32x128xf32> to vector<32x128xbf16>
      %c0_14 = arith.constant 0 : index
      %c0_15 = arith.constant 0 : index
      %17 = vector.load %arg5[%c0_14, %c0_15] : memref<32x128xbf16, #tpu.memory_space<vmem>>, vector<32x128xbf16>
      tpu.vector_store %arg5[%c0_14, %c0_15], %16 {strides = array<i32>} : memref<32x128xbf16, #tpu.memory_space<vmem>>, vector<32x128xbf16>,
    } else {
    }
    return
  }
  func.func @transform_0(%arg0: i32, %arg1: i32) -> (i32, i32) {
    %c0_i32 = arith.constant 0 : i32
    return %arg0, %arg1 : i32, i32
  }
  func.func @transform_1(%arg0: i32, %arg1: i32) -> (i32, i32) {
    %c0_i32 = arith.constant 0 : i32
    %c0_i32_0 = arith.constant 0 : i32
    return %arg1, %c0_i32 : i32, i32
  }
  func.func @transform_2(%arg0: i32, %arg1: i32) -> (i32, i32) {
    %c0_i32 = arith.constant 0 : i32
    %c0_i32_0 = arith.constant 0 : i32
    %c0_i32_1 = arith.constant 0 : i32
    return %c0_i32, %c0_i32_0 : i32, i32
  }
  func.func @transform_3(%arg0: i32, %arg1: i32) -> (i32, i32) {
    %c0_i32 = arith.constant 0 : i32
    %c0_i32_0 = arith.constant 0 : i32
    return %arg0, %c0_i32 : i32, i32
  }
}

module attributes {stable_mosaic.version = 11 : i64} {
  func.func @_coattn_kernel(%arg0: i32, %arg1: memref<2xi32, #tpu.memory_space<smem>>, %arg2: memref<2xi32, #tpu.memory_space<smem>>, %arg3: memref<1x8x32xbf16, #tpu.memory_space<vmem>>, %arg4: memref<1x8x32xbf16, #tpu.memory_space<vmem>>, %arg5: memref<1x8x32xbf16, #tpu.memory_space<vmem>>, %arg6: memref<1x8x32xbf16, #tpu.memory_space<vmem>>, %arg7: memref<1x8x32xbf16, #tpu.memory_space<vmem>>) attributes {dimension_semantics = [#tpu.dimension_semantics<parallel>], iteration_bounds = array<i64: 2>, scalar_prefetch = 2 : i64, scratch_operands = 0 : i64, tpu.core_type = #tpu.core_type<tc>, window_params = [{transform_indices = @transform_0, window_bounds = array<i64: 1, 8, 32>}, {transform_indices = @transform_1, window_bounds = array<i64: 1, 8, 32>}, {transform_indices = @transform_2, window_bounds = array<i64: 1, 8, 32>}, {transform_indices = @transform_3, window_bounds = array<i64: 1, 8, 32>}, {transform_indices = @transform_4, window_bounds = array<i64: 1, 8, 32>}]} {
    %c0 = arith.constant 0 : index
    %c0_0 = arith.constant 0 : index
    %c0_1 = arith.constant 0 : index
    %0 = vector.load %arg3[%c0, %c0_0, %c0_1] : memref<1x8x32xbf16, #tpu.memory_space<vmem>>, vector<1x8x32xbf16>
    %1 = vector.shape_cast %0 : vector<1x8x32xbf16> to vector<8x32xbf16>
    %c0_2 = arith.constant 0 : index
    %c0_3 = arith.constant 0 : index
    %c0_4 = arith.constant 0 : index
    %2 = vector.load %arg4[%c0_2, %c0_3, %c0_4] : memref<1x8x32xbf16, #tpu.memory_space<vmem>>, vector<1x8x32xbf16>
    %3 = vector.shape_cast %2 : vector<1x8x32xbf16> to vector<8x32xbf16>
    "tpu.trace_start"() <{level = 10 : i32, message = "pd,qd->pq"}> : () -> ()
    %cst = arith.constant dense<0.000000e+00> : vector<8x8xf32>
    %4 = tpu.matmul %1, %3, %cst {dimension_numbers = #tpu.dot_dimension_numbers<[1], [1], [0], [0], [0, 0, 1, 0], [], []>} : vector<8x32xbf16>, vector<8x32xbf16>, vector<8x8xf32> -> vector<8x8xf32>
    "tpu.trace_stop"() : () -> ()
    %5 = tpu.iota {dimensions = array<i32: 0>} : vector<8x8xi32>
    %6 = tpu.iota {dimensions = array<i32: 1>} : vector<8x8xi32>
    %7 = arith.index_cast %arg0 : i32 to index
    %8 = memref.load %arg1[%7] : memref<2xi32, #tpu.memory_space<smem>>
    %9 = vector.broadcast %8 : i32 to vector<8x8xi32>
    %10 = arith.cmpi slt, %5, %9 : vector<8x8xi32>
    %11 = arith.index_cast %arg0 : i32 to index
    %12 = memref.load %arg2[%11] : memref<2xi32, #tpu.memory_space<smem>>
    %13 = vector.broadcast %12 : i32 to vector<8x8xi32>
    %14 = arith.cmpi slt, %6, %13 : vector<8x8xi32>
    %15 = arith.andi %10, %14 : vector<8x8xi1>
    %cst_5 = arith.constant 1.000000e+09 : f32
    %16 = vector.broadcast %cst_5 : f32 to vector<8x8xf32>
    %17 = arith.subf %4, %16 : vector<8x8xf32>
    %18 = arith.select %15, %4, %17 : vector<8x8xi1>, vector<8x8xf32>
    %cst_6 = arith.constant dense<0xFF800000> : vector<8xf32>
    %19 = vector.multi_reduction <maximumf>, %18, %cst_6 [0] : vector<8x8xf32> to vector<8xf32>
    %20 = vector.shape_cast %19 : vector<8xf32> to vector<1x8xf32>
    %21 = vector.broadcast %20 : vector<1x8xf32> to vector<8x8xf32>
    %22 = arith.subf %18, %21 : vector<8x8xf32>
    %23 = math.exp %22 : vector<8x8xf32>
    %cst_7 = arith.constant dense<0.000000e+00> : vector<8xf32>
    %24 = vector.multi_reduction <add>, %23, %cst_7 [0] : vector<8x8xf32> to vector<8xf32>
    %25 = vector.shape_cast %24 : vector<8xf32> to vector<1x8xf32>
    %26 = tpu.reciprocal %25 {approx = true} : vector<1x8xf32> -> vector<1x8xf32>
    %27 = vector.broadcast %26 : vector<1x8xf32> to vector<8x8xf32>
    %28 = arith.mulf %23, %27 : vector<8x8xf32>
    %cst_8 = arith.constant 0.000000e+00 : f32
    %29 = vector.broadcast %cst_8 : f32 to vector<8x8xf32>
    %30 = arith.select %14, %28, %29 : vector<8x8xi1>, vector<8x8xf32>
    %cst_9 = arith.constant dense<0xFF800000> : vector<8xf32>
    %31 = vector.multi_reduction <maximumf>, %18, %cst_9 [1] : vector<8x8xf32> to vector<8xf32>
    %32 = vector.shape_cast %31 : vector<8xf32> to vector<8x1xf32>
    %33 = vector.broadcast %32 : vector<8x1xf32> to vector<8x8xf32>
    %34 = arith.subf %18, %33 : vector<8x8xf32>
    %35 = math.exp %34 : vector<8x8xf32>
    %cst_10 = arith.constant dense<0.000000e+00> : vector<8xf32>
    %36 = vector.multi_reduction <add>, %35, %cst_10 [1] : vector<8x8xf32> to vector<8xf32>
    %37 = vector.shape_cast %36 : vector<8xf32> to vector<8x1xf32>
    %38 = tpu.reciprocal %37 {approx = true} : vector<8x1xf32> -> vector<8x1xf32>
    %39 = vector.broadcast %38 : vector<8x1xf32> to vector<8x8xf32>
    %40 = arith.mulf %35, %39 : vector<8x8xf32>
    %cst_11 = arith.constant 0.000000e+00 : f32
    %41 = vector.broadcast %cst_11 : f32 to vector<8x8xf32>
    %42 = arith.select %10, %40, %41 : vector<8x8xi1>, vector<8x8xf32>
    %43 = arith.truncf %30 : vector<8x8xf32> to vector<8x8xbf16>
    %44 = arith.truncf %42 : vector<8x8xf32> to vector<8x8xbf16>
    "tpu.trace_start"() <{level = 10 : i32, message = "pq,pd->qd"}> : () -> ()
    %cst_12 = arith.constant dense<0.000000e+00> : vector<8x32xf32>
    %45 = tpu.matmul %43, %1, %cst_12 {dimension_numbers = #tpu.dot_dimension_numbers<[0], [0], [1], [1], [0, 1, 1, 1], [], []>} : vector<8x8xbf16>, vector<8x32xbf16>, vector<8x32xf32> -> vector<8x32xf32>
    "tpu.trace_stop"() : () -> ()
    %46 = arith.truncf %45 : vector<8x32xf32> to vector<8x32xbf16>
    "tpu.trace_start"() <{level = 10 : i32, message = "pq,qd->pd"}> : () -> ()
    %cst_13 = arith.constant dense<0.000000e+00> : vector<8x32xf32>
    %47 = tpu.matmul %44, %3, %cst_13 {dimension_numbers = #tpu.dot_dimension_numbers<[1], [0], [0], [1], [0, 0, 1, 1], [], []>} : vector<8x8xbf16>, vector<8x32xbf16>, vector<8x32xf32> -> vector<8x32xf32>
    %cst_14 = arith.constant dense<0.000000e+00> : vector<8x32xf32>
    %48 = tpu.matmul %44, %46, %cst_14 {dimension_numbers = #tpu.dot_dimension_numbers<[1], [0], [0], [1], [0, 0, 1, 1], [], []>} : vector<8x8xbf16>, vector<8x32xbf16>, vector<8x32xf32> -> vector<8x32xf32>
    "tpu.trace_stop"() : () -> ()
    %49 = arith.truncf %47 : vector<8x32xf32> to vector<8x32xbf16>
    %c0_15 = arith.constant 0 : index
    %c0_16 = arith.constant 0 : index
    %c0_17 = arith.constant 0 : index
    %50 = vector.load %arg5[%c0_15, %c0_16, %c0_17] : memref<1x8x32xbf16, #tpu.memory_space<vmem>>, vector<1x8x32xbf16>
    %51 = vector.shape_cast %50 : vector<1x8x32xbf16> to vector<8x32xbf16>
    %52 = vector.shape_cast %49 : vector<8x32xbf16> to vector<1x8x32xbf16>
    tpu.vector_store %arg5[%c0_15, %c0_16, %c0_17], %52 {strides = array<i32>} : memref<1x8x32xbf16, #tpu.memory_space<vmem>>, vector<1x8x32xbf16>,
    %c0_18 = arith.constant 0 : index
    %c0_19 = arith.constant 0 : index
    %c0_20 = arith.constant 0 : index
    %53 = vector.load %arg6[%c0_18, %c0_19, %c0_20] : memref<1x8x32xbf16, #tpu.memory_space<vmem>>, vector<1x8x32xbf16>
    %54 = vector.shape_cast %53 : vector<1x8x32xbf16> to vector<8x32xbf16>
    %55 = vector.shape_cast %46 : vector<8x32xbf16> to vector<1x8x32xbf16>
    tpu.vector_store %arg6[%c0_18, %c0_19, %c0_20], %55 {strides = array<i32>} : memref<1x8x32xbf16, #tpu.memory_space<vmem>>, vector<1x8x32xbf16>,
    %56 = arith.truncf %48 : vector<8x32xf32> to vector<8x32xbf16>
    %c0_21 = arith.constant 0 : index
    %c0_22 = arith.constant 0 : index
    %c0_23 = arith.constant 0 : index
    %57 = vector.load %arg7[%c0_21, %c0_22, %c0_23] : memref<1x8x32xbf16, #tpu.memory_space<vmem>>, vector<1x8x32xbf16>
    %58 = vector.shape_cast %57 : vector<1x8x32xbf16> to vector<8x32xbf16>
    %59 = vector.shape_cast %56 : vector<8x32xbf16> to vector<1x8x32xbf16>
    tpu.vector_store %arg7[%c0_21, %c0_22, %c0_23], %59 {strides = array<i32>} : memref<1x8x32xbf16, #tpu.memory_space<vmem>>, vector<1x8x32xbf16>,
    return
  }
  func.func @transform_0(%arg0: i32, %arg1: memref<2xi32, #tpu.memory_space<smem>>, %arg2: memref<2xi32, #tpu.memory_space<smem>>) -> (i32, i32, i32) {
    %c0_i32 = arith.constant 0 : i32
    %c0_i32_0 = arith.constant 0 : i32
    %c0_i32_1 = arith.constant 0 : i32
    return %arg0, %c0_i32, %c0_i32_0 : i32, i32, i32
  }
  func.func @transform_1(%arg0: i32, %arg1: memref<2xi32, #tpu.memory_space<smem>>, %arg2: memref<2xi32, #tpu.memory_space<smem>>) -> (i32, i32, i32) {
    %c0_i32 = arith.constant 0 : i32
    %c0_i32_0 = arith.constant 0 : i32
    %c0_i32_1 = arith.constant 0 : i32
    return %arg0, %c0_i32, %c0_i32_0 : i32, i32, i32
  }
  func.func @transform_2(%arg0: i32, %arg1: memref<2xi32, #tpu.memory_space<smem>>, %arg2: memref<2xi32, #tpu.memory_space<smem>>) -> (i32, i32, i32) {
    %c0_i32 = arith.constant 0 : i32
    %c0_i32_0 = arith.constant 0 : i32
    %c0_i32_1 = arith.constant 0 : i32
    return %arg0, %c0_i32, %c0_i32_0 : i32, i32, i32
  }
  func.func @transform_3(%arg0: i32, %arg1: memref<2xi32, #tpu.memory_space<smem>>, %arg2: memref<2xi32, #tpu.memory_space<smem>>) -> (i32, i32, i32) {
    %c0_i32 = arith.constant 0 : i32
    %c0_i32_0 = arith.constant 0 : i32
    %c0_i32_1 = arith.constant 0 : i32
    return %arg0, %c0_i32, %c0_i32_0 : i32, i32, i32
  }
  func.func @transform_4(%arg0: i32, %arg1: memref<2xi32, #tpu.memory_space<smem>>, %arg2: memref<2xi32, #tpu.memory_space<smem>>) -> (i32, i32, i32) {
    %c0_i32 = arith.constant 0 : i32
    %c0_i32_0 = arith.constant 0 : i32
    %c0_i32_1 = arith.constant 0 : i32
    return %arg0, %c0_i32, %c0_i32_0 : i32, i32, i32
  }
}

module attributes {stable_mosaic.version = 11 : i64} {
  func.func @kernel(%arg0: i32, %arg1: memref<1x2x64xbf16, #tpu.memory_space<vmem>>, %arg2: memref<1x2x64xbf16, #tpu.memory_space<vmem>>, %arg3: memref<1x2x1xf32, #tpu.memory_space<vmem>>, %arg4: memref<1x2x1xf32, #tpu.memory_space<vmem>>, %arg5: memref<16x64xbf16, #tpu.memory_space<vmem>>, %arg6: memref<16x64xbf16, #tpu.memory_space<vmem>>, %arg7: memref<1x2x16xbf16, #tpu.memory_space<vmem>>, %arg8: memref<1x2x16xbf16, #tpu.memory_space<vmem>>, %arg9: memref<2x16xf32, #tpu.memory_space<vmem>>, %arg10: memref<2x16xf32, #tpu.memory_space<vmem>>, %arg11: memref<2x16xf32, #tpu.memory_space<vmem>>, %arg12: memref<2x16xf32, #tpu.memory_space<vmem>>) attributes {dimension_semantics = [#tpu.dimension_semantics<arbitrary>], iteration_bounds = array<i64: 8>, scalar_prefetch = 0 : i64, scratch_operands = 4 : i64, tpu.core_type = #tpu.core_type<tc>, window_params = [{transform_indices = @transform_0, window_bounds = array<i64: 1, 2, 64>}, {transform_indices = @transform_1, window_bounds = array<i64: 1, 2, 64>}, {transform_indices = @transform_2, window_bounds = array<i64: 1, 2, 1>}, {transform_indices = @transform_3, window_bounds = array<i64: 1, 2, 1>}, {pipeline_mode = #tpu.pipeline_mode<synchronous>, transform_indices = @transform_4, window_bounds = array<i64: 16, 64>}, {pipeline_mode = #tpu.pipeline_mode<synchronous>, transform_indices = @transform_5, window_bounds = array<i64: 16, 64>}, {transform_indices = @transform_6, window_bounds = array<i64: 1, 2, 16>}, {transform_indices = @transform_7, window_bounds = array<i64: 1, 2, 16>}]} {
    %c0_i32 = arith.constant 0 : i32
    %0 = arith.cmpi eq, %arg0, %c0_i32 : i32
    %1 = arith.extui %0 : i1 to i32
    %c0_i32_0 = arith.constant 0 : i32
    %2 = arith.cmpi ne, %1, %c0_i32_0 : i32
    scf.if %2 {
      %cst_61 = arith.constant 0.000000e+00 : f32
      %131 = vector.broadcast %cst_61 : f32 to vector<2x16xf32>
      %c0_62 = arith.constant 0 : index
      %c0_63 = arith.constant 0 : index
      %132 = vector.load %arg9[%c0_62, %c0_63] : memref<2x16xf32, #tpu.memory_space<vmem>>, vector<2x16xf32>
      tpu.vector_store %arg9[%c0_62, %c0_63], %131 {strides = array<i32>} : memref<2x16xf32, #tpu.memory_space<vmem>>, vector<2x16xf32>,
      %cst_64 = arith.constant 0.000000e+00 : f32
      %133 = vector.broadcast %cst_64 : f32 to vector<2x16xf32>
      %c0_65 = arith.constant 0 : index
      %c0_66 = arith.constant 0 : index
      %134 = vector.load %arg10[%c0_65, %c0_66] : memref<2x16xf32, #tpu.memory_space<vmem>>, vector<2x16xf32>
      tpu.vector_store %arg10[%c0_65, %c0_66], %133 {strides = array<i32>} : memref<2x16xf32, #tpu.memory_space<vmem>>, vector<2x16xf32>,
      %cst_67 = arith.constant 0.000000e+00 : f32
      %135 = vector.broadcast %cst_67 : f32 to vector<2x16xf32>
      %c0_68 = arith.constant 0 : index
      %c0_69 = arith.constant 0 : index
      %136 = vector.load %arg11[%c0_68, %c0_69] : memref<2x16xf32, #tpu.memory_space<vmem>>, vector<2x16xf32>
      tpu.vector_store %arg11[%c0_68, %c0_69], %135 {strides = array<i32>} : memref<2x16xf32, #tpu.memory_space<vmem>>, vector<2x16xf32>,
      %cst_70 = arith.constant 0.000000e+00 : f32
      %137 = vector.broadcast %cst_70 : f32 to vector<2x16xf32>
      %c0_71 = arith.constant 0 : index
      %c0_72 = arith.constant 0 : index
      %138 = vector.load %arg12[%c0_71, %c0_72] : memref<2x16xf32, #tpu.memory_space<vmem>>, vector<2x16xf32>
      tpu.vector_store %arg12[%c0_71, %c0_72], %137 {strides = array<i32>} : memref<2x16xf32, #tpu.memory_space<vmem>>, vector<2x16xf32>,
    } else {
    }
    %c0 = arith.constant 0 : index
    %c0_1 = arith.constant 0 : index
    %c0_2 = arith.constant 0 : index
    %3 = vector.load %arg1[%c0, %c0_1, %c0_2] : memref<1x2x64xbf16, #tpu.memory_space<vmem>>, vector<1x2x64xbf16>
    %4 = vector.shape_cast %3 : vector<1x2x64xbf16> to vector<2x64xbf16>
    %c0_3 = arith.constant 0 : index
    %c0_4 = arith.constant 0 : index
    %c0_5 = arith.constant 0 : index
    %5 = vector.load %arg3[%c0_3, %c0_4, %c0_5] : memref<1x2x1xf32, #tpu.memory_space<vmem>>, vector<1x2x1xf32>
    %6 = vector.shape_cast %5 : vector<1x2x1xf32> to vector<2x1xf32>
    %c0_6 = arith.constant 0 : index
    %c0_7 = arith.constant 0 : index
    %7 = vector.load %arg9[%c0_6, %c0_7] : memref<2x16xf32, #tpu.memory_space<vmem>>, vector<2x16xf32>
    %c0_8 = arith.constant 0 : index
    %c0_9 = arith.constant 0 : index
    %8 = vector.load %arg10[%c0_8, %c0_9] : memref<2x16xf32, #tpu.memory_space<vmem>>, vector<2x16xf32>
    %9 = arith.extf %4 : vector<2x64xbf16> to vector<2x64xf32>
    %10 = arith.truncf %7 : vector<2x16xf32> to vector<2x16xbf16>
    %c0_10 = arith.constant 0 : index
    %c0_11 = arith.constant 0 : index
    %11 = vector.load %arg5[%c0_10, %c0_11] : memref<16x64xbf16, #tpu.memory_space<vmem>>, vector<16x64xbf16>
    %cst = arith.constant dense<0.000000e+00> : vector<2x64xf32>
    %12 = tpu.matmul %10, %11, %cst {dimension_numbers = #tpu.dot_dimension_numbers<[1], [0], [0], [1], [0, 0, 1, 1], [], []>} : vector<2x16xbf16>, vector<16x64xbf16>, vector<2x64xf32> -> vector<2x64xf32>
    %13 = arith.addf %9, %12 : vector<2x64xf32>
    %14 = vector.extract_strided_slice %13 {offsets = [0, 0], sizes = [2, 16], strides = [1, 1]} : vector<2x64xf32> to vector<2x16xf32>
    %cst_12 = arith.constant 0.000000e+00 : f32
    %15 = vector.broadcast %cst_12 : f32 to vector<2x16xf32>
    %16 = arith.subf %15, %14 : vector<2x16xf32>
    %17 = math.exp %16 : vector<2x16xf32>
    %cst_13 = arith.constant 1.000000e+00 : f32
    %18 = vector.broadcast %cst_13 : f32 to vector<2x16xf32>
    %19 = arith.addf %18, %17 : vector<2x16xf32>
    %cst_14 = arith.constant 1.000000e+00 : f32
    %20 = vector.broadcast %cst_14 : f32 to vector<2x16xf32>
    %21 = arith.divf %20, %19 : vector<2x16xf32>
    %22 = vector.extract_strided_slice %13 {offsets = [0, 16], sizes = [2, 16], strides = [1, 1]} : vector<2x64xf32> to vector<2x16xf32>
    %cst_15 = arith.constant 0.000000e+00 : f32
    %23 = vector.broadcast %cst_15 : f32 to vector<2x16xf32>
    %24 = arith.subf %23, %22 : vector<2x16xf32>
    %25 = math.exp %24 : vector<2x16xf32>
    %cst_16 = arith.constant 1.000000e+00 : f32
    %26 = vector.broadcast %cst_16 : f32 to vector<2x16xf32>
    %27 = arith.addf %26, %25 : vector<2x16xf32>
    %cst_17 = arith.constant 1.000000e+00 : f32
    %28 = vector.broadcast %cst_17 : f32 to vector<2x16xf32>
    %29 = arith.divf %28, %27 : vector<2x16xf32>
    %30 = vector.extract_strided_slice %13 {offsets = [0, 32], sizes = [2, 16], strides = [1, 1]} : vector<2x64xf32> to vector<2x16xf32>
    %31 = math.tanh %30 : vector<2x16xf32>
    %32 = vector.extract_strided_slice %13 {offsets = [0, 48], sizes = [2, 16], strides = [1, 1]} : vector<2x64xf32> to vector<2x16xf32>
    %cst_18 = arith.constant 0.000000e+00 : f32
    %33 = vector.broadcast %cst_18 : f32 to vector<2x16xf32>
    %34 = arith.subf %33, %32 : vector<2x16xf32>
    %35 = math.exp %34 : vector<2x16xf32>
    %cst_19 = arith.constant 1.000000e+00 : f32
    %36 = vector.broadcast %cst_19 : f32 to vector<2x16xf32>
    %37 = arith.addf %36, %35 : vector<2x16xf32>
    %cst_20 = arith.constant 1.000000e+00 : f32
    %38 = vector.broadcast %cst_20 : f32 to vector<2x16xf32>
    %39 = arith.divf %38, %37 : vector<2x16xf32>
    %40 = arith.mulf %29, %8 : vector<2x16xf32>
    %41 = arith.mulf %21, %31 : vector<2x16xf32>
    %42 = arith.addf %40, %41 : vector<2x16xf32>
    %43 = math.tanh %42 : vector<2x16xf32>
    %44 = arith.mulf %39, %43 : vector<2x16xf32>
    %45 = vector.broadcast %6 : vector<2x1xf32> to vector<2x16xf32>
    %46 = arith.mulf %45, %44 : vector<2x16xf32>
    %cst_21 = arith.constant 1.000000e+00 : f32
    %47 = vector.broadcast %cst_21 : f32 to vector<2x1xf32>
    %48 = arith.subf %47, %6 : vector<2x1xf32>
    %49 = vector.broadcast %48 : vector<2x1xf32> to vector<2x16xf32>
    %50 = arith.mulf %49, %7 : vector<2x16xf32>
    %51 = arith.addf %46, %50 : vector<2x16xf32>
    %52 = vector.broadcast %6 : vector<2x1xf32> to vector<2x16xf32>
    %53 = arith.mulf %52, %42 : vector<2x16xf32>
    %cst_22 = arith.constant 1.000000e+00 : f32
    %54 = vector.broadcast %cst_22 : f32 to vector<2x1xf32>
    %55 = arith.subf %54, %6 : vector<2x1xf32>
    %56 = vector.broadcast %55 : vector<2x1xf32> to vector<2x16xf32>
    %57 = arith.mulf %56, %8 : vector<2x16xf32>
    %58 = arith.addf %53, %57 : vector<2x16xf32>
    %c0_23 = arith.constant 0 : index
    %c0_24 = arith.constant 0 : index
    %59 = vector.load %arg9[%c0_23, %c0_24] : memref<2x16xf32, #tpu.memory_space<vmem>>, vector<2x16xf32>
    tpu.vector_store %arg9[%c0_23, %c0_24], %51 {strides = array<i32>} : memref<2x16xf32, #tpu.memory_space<vmem>>, vector<2x16xf32>,
    %c0_25 = arith.constant 0 : index
    %c0_26 = arith.constant 0 : index
    %60 = vector.load %arg10[%c0_25, %c0_26] : memref<2x16xf32, #tpu.memory_space<vmem>>, vector<2x16xf32>
    tpu.vector_store %arg10[%c0_25, %c0_26], %58 {strides = array<i32>} : memref<2x16xf32, #tpu.memory_space<vmem>>, vector<2x16xf32>,
    %61 = vector.broadcast %6 : vector<2x1xf32> to vector<2x16xf32>
    %62 = arith.mulf %51, %61 : vector<2x16xf32>
    %63 = arith.truncf %62 : vector<2x16xf32> to vector<2x16xbf16>
    %c0_27 = arith.constant 0 : index
    %c0_28 = arith.constant 0 : index
    %c0_29 = arith.constant 0 : index
    %64 = vector.load %arg7[%c0_27, %c0_28, %c0_29] : memref<1x2x16xbf16, #tpu.memory_space<vmem>>, vector<1x2x16xbf16>
    %65 = vector.shape_cast %64 : vector<1x2x16xbf16> to vector<2x16xbf16>
    %66 = vector.shape_cast %63 : vector<2x16xbf16> to vector<1x2x16xbf16>
    tpu.vector_store %arg7[%c0_27, %c0_28, %c0_29], %66 {strides = array<i32>} : memref<1x2x16xbf16, #tpu.memory_space<vmem>>, vector<1x2x16xbf16>,
    %c0_30 = arith.constant 0 : index
    %c0_31 = arith.constant 0 : index
    %c0_32 = arith.constant 0 : index
    %67 = vector.load %arg2[%c0_30, %c0_31, %c0_32] : memref<1x2x64xbf16, #tpu.memory_space<vmem>>, vector<1x2x64xbf16>
    %68 = vector.shape_cast %67 : vector<1x2x64xbf16> to vector<2x64xbf16>
    %c0_33 = arith.constant 0 : index
    %c0_34 = arith.constant 0 : index
    %c0_35 = arith.constant 0 : index
    %69 = vector.load %arg4[%c0_33, %c0_34, %c0_35] : memref<1x2x1xf32, #tpu.memory_space<vmem>>, vector<1x2x1xf32>
    %70 = vector.shape_cast %69 : vector<1x2x1xf32> to vector<2x1xf32>
    %c0_36 = arith.constant 0 : index
    %c0_37 = arith.constant 0 : index
    %71 = vector.load %arg11[%c0_36, %c0_37] : memref<2x16xf32, #tpu.memory_space<vmem>>, vector<2x16xf32>
    %c0_38 = arith.constant 0 : index
    %c0_39 = arith.constant 0 : index
    %72 = vector.load %arg12[%c0_38, %c0_39] : memref<2x16xf32, #tpu.memory_space<vmem>>, vector<2x16xf32>
    %73 = arith.extf %68 : vector<2x64xbf16> to vector<2x64xf32>
    %74 = arith.truncf %71 : vector<2x16xf32> to vector<2x16xbf16>
    %c0_40 = arith.constant 0 : index
    %c0_41 = arith.constant 0 : index
    %75 = vector.load %arg6[%c0_40, %c0_41] : memref<16x64xbf16, #tpu.memory_space<vmem>>, vector<16x64xbf16>
    %cst_42 = arith.constant dense<0.000000e+00> : vector<2x64xf32>
    %76 = tpu.matmul %74, %75, %cst_42 {dimension_numbers = #tpu.dot_dimension_numbers<[1], [0], [0], [1], [0, 0, 1, 1], [], []>} : vector<2x16xbf16>, vector<16x64xbf16>, vector<2x64xf32> -> vector<2x64xf32>
    %77 = arith.addf %73, %76 : vector<2x64xf32>
    %78 = vector.extract_strided_slice %77 {offsets = [0, 0], sizes = [2, 16], strides = [1, 1]} : vector<2x64xf32> to vector<2x16xf32>
    %cst_43 = arith.constant 0.000000e+00 : f32
    %79 = vector.broadcast %cst_43 : f32 to vector<2x16xf32>
    %80 = arith.subf %79, %78 : vector<2x16xf32>
    %81 = math.exp %80 : vector<2x16xf32>
    %cst_44 = arith.constant 1.000000e+00 : f32
    %82 = vector.broadcast %cst_44 : f32 to vector<2x16xf32>
    %83 = arith.addf %82, %81 : vector<2x16xf32>
    %cst_45 = arith.constant 1.000000e+00 : f32
    %84 = vector.broadcast %cst_45 : f32 to vector<2x16xf32>
    %85 = arith.divf %84, %83 : vector<2x16xf32>
    %86 = vector.extract_strided_slice %77 {offsets = [0, 16], sizes = [2, 16], strides = [1, 1]} : vector<2x64xf32> to vector<2x16xf32>
    %cst_46 = arith.constant 0.000000e+00 : f32
    %87 = vector.broadcast %cst_46 : f32 to vector<2x16xf32>
    %88 = arith.subf %87, %86 : vector<2x16xf32>
    %89 = math.exp %88 : vector<2x16xf32>
    %cst_47 = arith.constant 1.000000e+00 : f32
    %90 = vector.broadcast %cst_47 : f32 to vector<2x16xf32>
    %91 = arith.addf %90, %89 : vector<2x16xf32>
    %cst_48 = arith.constant 1.000000e+00 : f32
    %92 = vector.broadcast %cst_48 : f32 to vector<2x16xf32>
    %93 = arith.divf %92, %91 : vector<2x16xf32>
    %94 = vector.extract_strided_slice %77 {offsets = [0, 32], sizes = [2, 16], strides = [1, 1]} : vector<2x64xf32> to vector<2x16xf32>
    %95 = math.tanh %94 : vector<2x16xf32>
    %96 = vector.extract_strided_slice %77 {offsets = [0, 48], sizes = [2, 16], strides = [1, 1]} : vector<2x64xf32> to vector<2x16xf32>
    %cst_49 = arith.constant 0.000000e+00 : f32
    %97 = vector.broadcast %cst_49 : f32 to vector<2x16xf32>
    %98 = arith.subf %97, %96 : vector<2x16xf32>
    %99 = math.exp %98 : vector<2x16xf32>
    %cst_50 = arith.constant 1.000000e+00 : f32
    %100 = vector.broadcast %cst_50 : f32 to vector<2x16xf32>
    %101 = arith.addf %100, %99 : vector<2x16xf32>
    %cst_51 = arith.constant 1.000000e+00 : f32
    %102 = vector.broadcast %cst_51 : f32 to vector<2x16xf32>
    %103 = arith.divf %102, %101 : vector<2x16xf32>
    %104 = arith.mulf %93, %72 : vector<2x16xf32>
    %105 = arith.mulf %85, %95 : vector<2x16xf32>
    %106 = arith.addf %104, %105 : vector<2x16xf32>
    %107 = math.tanh %106 : vector<2x16xf32>
    %108 = arith.mulf %103, %107 : vector<2x16xf32>
    %109 = vector.broadcast %70 : vector<2x1xf32> to vector<2x16xf32>
    %110 = arith.mulf %109, %108 : vector<2x16xf32>
    %cst_52 = arith.constant 1.000000e+00 : f32
    %111 = vector.broadcast %cst_52 : f32 to vector<2x1xf32>
    %112 = arith.subf %111, %70 : vector<2x1xf32>
    %113 = vector.broadcast %112 : vector<2x1xf32> to vector<2x16xf32>
    %114 = arith.mulf %113, %71 : vector<2x16xf32>
    %115 = arith.addf %110, %114 : vector<2x16xf32>
    %116 = vector.broadcast %70 : vector<2x1xf32> to vector<2x16xf32>
    %117 = arith.mulf %116, %106 : vector<2x16xf32>
    %cst_53 = arith.constant 1.000000e+00 : f32
    %118 = vector.broadcast %cst_53 : f32 to vector<2x1xf32>
    %119 = arith.subf %118, %70 : vector<2x1xf32>
    %120 = vector.broadcast %119 : vector<2x1xf32> to vector<2x16xf32>
    %121 = arith.mulf %120, %72 : vector<2x16xf32>
    %122 = arith.addf %117, %121 : vector<2x16xf32>
    %c0_54 = arith.constant 0 : index
    %c0_55 = arith.constant 0 : index
    %123 = vector.load %arg11[%c0_54, %c0_55] : memref<2x16xf32, #tpu.memory_space<vmem>>, vector<2x16xf32>
    tpu.vector_store %arg11[%c0_54, %c0_55], %115 {strides = array<i32>} : memref<2x16xf32, #tpu.memory_space<vmem>>, vector<2x16xf32>,
    %c0_56 = arith.constant 0 : index
    %c0_57 = arith.constant 0 : index
    %124 = vector.load %arg12[%c0_56, %c0_57] : memref<2x16xf32, #tpu.memory_space<vmem>>, vector<2x16xf32>
    tpu.vector_store %arg12[%c0_56, %c0_57], %122 {strides = array<i32>} : memref<2x16xf32, #tpu.memory_space<vmem>>, vector<2x16xf32>,
    %125 = vector.broadcast %70 : vector<2x1xf32> to vector<2x16xf32>
    %126 = arith.mulf %115, %125 : vector<2x16xf32>
    %127 = arith.truncf %126 : vector<2x16xf32> to vector<2x16xbf16>
    %c0_58 = arith.constant 0 : index
    %c0_59 = arith.constant 0 : index
    %c0_60 = arith.constant 0 : index
    %128 = vector.load %arg8[%c0_58, %c0_59, %c0_60] : memref<1x2x16xbf16, #tpu.memory_space<vmem>>, vector<1x2x16xbf16>
    %129 = vector.shape_cast %128 : vector<1x2x16xbf16> to vector<2x16xbf16>
    %130 = vector.shape_cast %127 : vector<2x16xbf16> to vector<1x2x16xbf16>
    tpu.vector_store %arg8[%c0_58, %c0_59, %c0_60], %130 {strides = array<i32>} : memref<1x2x16xbf16, #tpu.memory_space<vmem>>, vector<1x2x16xbf16>,
    return
  }
  func.func @transform_0(%arg0: i32) -> (i32, i32, i32) {
    %c0_i32 = arith.constant 0 : i32
    %c0_i32_0 = arith.constant 0 : i32
    %c0_i32_1 = arith.constant 0 : i32
    return %arg0, %c0_i32, %c0_i32_0 : i32, i32, i32
  }
  func.func @transform_1(%arg0: i32) -> (i32, i32, i32) {
    %c7_i32 = arith.constant 7 : i32
    %0 = arith.subi %c7_i32, %arg0 : i32
    %c0_i32 = arith.constant 0 : i32
    %c0_i32_0 = arith.constant 0 : i32
    %c0_i32_1 = arith.constant 0 : i32
    return %0, %c0_i32, %c0_i32_0 : i32, i32, i32
  }
  func.func @transform_2(%arg0: i32) -> (i32, i32, i32) {
    %c0_i32 = arith.constant 0 : i32
    %c0_i32_0 = arith.constant 0 : i32
    %c0_i32_1 = arith.constant 0 : i32
    return %arg0, %c0_i32, %c0_i32_0 : i32, i32, i32
  }
  func.func @transform_3(%arg0: i32) -> (i32, i32, i32) {
    %c7_i32 = arith.constant 7 : i32
    %0 = arith.subi %c7_i32, %arg0 : i32
    %c0_i32 = arith.constant 0 : i32
    %c0_i32_0 = arith.constant 0 : i32
    %c0_i32_1 = arith.constant 0 : i32
    return %0, %c0_i32, %c0_i32_0 : i32, i32, i32
  }
  func.func @transform_4(%arg0: i32) -> (i32, i32) {
    %c0_i32 = arith.constant 0 : i32
    %c0_i32_0 = arith.constant 0 : i32
    %c0_i32_1 = arith.constant 0 : i32
    return %c0_i32, %c0_i32_0 : i32, i32
  }
  func.func @transform_5(%arg0: i32) -> (i32, i32) {
    %c0_i32 = arith.constant 0 : i32
    %c0_i32_0 = arith.constant 0 : i32
    %c0_i32_1 = arith.constant 0 : i32
    return %c0_i32, %c0_i32_0 : i32, i32
  }
  func.func @transform_6(%arg0: i32) -> (i32, i32, i32) {
    %c0_i32 = arith.constant 0 : i32
    %c0_i32_0 = arith.constant 0 : i32
    %c0_i32_1 = arith.constant 0 : i32
    return %arg0, %c0_i32, %c0_i32_0 : i32, i32, i32
  }
  func.func @transform_7(%arg0: i32) -> (i32, i32, i32) {
    %c7_i32 = arith.constant 7 : i32
    %0 = arith.subi %c7_i32, %arg0 : i32
    %c0_i32 = arith.constant 0 : i32
    %c0_i32_0 = arith.constant 0 : i32
    %c0_i32_1 = arith.constant 0 : i32
    return %0, %c0_i32, %c0_i32_0 : i32, i32, i32
  }
}

module attributes {stable_mosaic.version = 11 : i64} {
  func.func @kernel(%arg0: i32, %arg1: i32, %arg2: memref<32x32xbf16, #tpu.memory_space<vmem>>, %arg3: memref<32x32xbf16, #tpu.memory_space<vmem>>, %arg4: memref<1x32xf32, #tpu.memory_space<vmem>>, %arg5: memref<32x32xbf16, #tpu.memory_space<vmem>>, %arg6: memref<32x32xf32, #tpu.memory_space<vmem>>) attributes {dimension_semantics = [#tpu.dimension_semantics<parallel>, #tpu.dimension_semantics<arbitrary>], iteration_bounds = array<i64: 1, 1>, scalar_prefetch = 0 : i64, scratch_operands = 1 : i64, tpu.core_type = #tpu.core_type<tc>, window_params = [{transform_indices = @transform_0, window_bounds = array<i64: 32, 32>}, {transform_indices = @transform_1, window_bounds = array<i64: 32, 32>}, {pipeline_mode = #tpu.pipeline_mode<synchronous>, transform_indices = @transform_2, window_bounds = array<i64: 1, 32>}, {transform_indices = @transform_3, window_bounds = array<i64: 32, 32>}]} {
    %c0_i32 = arith.constant 0 : i32
    %0 = arith.cmpi eq, %arg1, %c0_i32 : i32
    %1 = arith.extui %0 : i1 to i32
    %c0_i32_0 = arith.constant 0 : i32
    %2 = arith.cmpi ne, %1, %c0_i32_0 : i32
    scf.if %2 {
      %cst_10 = arith.constant 0.000000e+00 : f32
      %12 = vector.broadcast %cst_10 : f32 to vector<32x32xf32>
      %c0_11 = arith.constant 0 : index
      %c0_12 = arith.constant 0 : index
      %13 = vector.load %arg6[%c0_11, %c0_12] : memref<32x32xf32, #tpu.memory_space<vmem>>, vector<32x32xf32>
      tpu.vector_store %arg6[%c0_11, %c0_12], %12 {strides = array<i32>} : memref<32x32xf32, #tpu.memory_space<vmem>>, vector<32x32xf32>,
    } else {
    }
    %c0 = arith.constant 0 : index
    %c0_1 = arith.constant 0 : index
    %3 = vector.load %arg6[%c0, %c0_1] : memref<32x32xf32, #tpu.memory_space<vmem>>, vector<32x32xf32>
    %c0_2 = arith.constant 0 : index
    %c0_3 = arith.constant 0 : index
    %4 = vector.load %arg2[%c0_2, %c0_3] : memref<32x32xbf16, #tpu.memory_space<vmem>>, vector<32x32xbf16>
    %c0_4 = arith.constant 0 : index
    %c0_5 = arith.constant 0 : index
    %5 = vector.load %arg3[%c0_4, %c0_5] : memref<32x32xbf16, #tpu.memory_space<vmem>>, vector<32x32xbf16>
    %cst = arith.constant dense<0.000000e+00> : vector<32x32xf32>
    %6 = tpu.matmul %4, %5, %cst {dimension_numbers = #tpu.dot_dimension_numbers<[1], [0], [0], [1], [0, 0, 1, 1], [], []>} : vector<32x32xbf16>, vector<32x32xbf16>, vector<32x32xf32> -> vector<32x32xf32>
    %7 = arith.addf %3, %6 : vector<32x32xf32>
    %c0_6 = arith.constant 0 : index
    %c0_7 = arith.constant 0 : index
    %8 = vector.load %arg6[%c0_6, %c0_7] : memref<32x32xf32, #tpu.memory_space<vmem>>, vector<32x32xf32>
    tpu.vector_store %arg6[%c0_6, %c0_7], %7 {strides = array<i32>} : memref<32x32xf32, #tpu.memory_space<vmem>>, vector<32x32xf32>,
    %c0_i32_8 = arith.constant 0 : i32
    %9 = arith.cmpi eq, %arg1, %c0_i32_8 : i32
    %10 = arith.extui %9 : i1 to i32
    %c0_i32_9 = arith.constant 0 : i32
    %11 = arith.cmpi ne, %10, %c0_i32_9 : i32
    scf.if %11 {
      %c0_10 = arith.constant 0 : index
      %c0_11 = arith.constant 0 : index
      %12 = vector.load %arg6[%c0_10, %c0_11] : memref<32x32xf32, #tpu.memory_space<vmem>>, vector<32x32xf32>
      %c0_12 = arith.constant 0 : index
      %c0_13 = arith.constant 0 : index
      %13 = vector.load %arg4[%c0_12, %c0_13] : memref<1x32xf32, #tpu.memory_space<vmem>>, vector<1x32xf32>
      %14 = vector.broadcast %13 : vector<1x32xf32> to vector<32x32xf32>
      %15 = arith.addf %12, %14 : vector<32x32xf32>
      %16 = arith.truncf %15 : vector<32x32xf32> to vector<32x32xbf16>
      %c0_14 = arith.constant 0 : index
      %c0_15 = arith.constant 0 : index
      %17 = vector.load %arg5[%c0_14, %c0_15] : memref<32x32xbf16, #tpu.memory_space<vmem>>, vector<32x32xbf16>
      tpu.vector_store %arg5[%c0_14, %c0_15], %16 {strides = array<i32>} : memref<32x32xbf16, #tpu.memory_space<vmem>>, vector<32x32xbf16>,
    } else {
    }
    return
  }
  func.func @transform_0(%arg0: i32, %arg1: i32) -> (i32, i32) {
    %c0_i32 = arith.constant 0 : i32
    return %arg0, %arg1 : i32, i32
  }
  func.func @transform_1(%arg0: i32, %arg1: i32) -> (i32, i32) {
    %c0_i32 = arith.constant 0 : i32
    %c0_i32_0 = arith.constant 0 : i32
    return %arg1, %c0_i32 : i32, i32
  }
  func.func @transform_2(%arg0: i32, %arg1: i32) -> (i32, i32) {
    %c0_i32 = arith.constant 0 : i32
    %c0_i32_0 = arith.constant 0 : i32
    %c0_i32_1 = arith.constant 0 : i32
    return %c0_i32, %c0_i32_0 : i32, i32
  }
  func.func @transform_3(%arg0: i32, %arg1: i32) -> (i32, i32) {
    %c0_i32 = arith.constant 0 : i32
    %c0_i32_0 = arith.constant 0 : i32
    return %arg0, %c0_i32 : i32, i32
  }
}

module attributes {stable_mosaic.version = 11 : i64} {
  func.func @_coattn_kernel(%arg0: i32, %arg1: memref<2xi32, #tpu.memory_space<smem>>, %arg2: memref<2xi32, #tpu.memory_space<smem>>, %arg3: memref<1x8x32xbf16, #tpu.memory_space<vmem>>, %arg4: memref<1x8x32xbf16, #tpu.memory_space<vmem>>, %arg5: memref<1x8x32xbf16, #tpu.memory_space<vmem>>, %arg6: memref<1x8x32xbf16, #tpu.memory_space<vmem>>, %arg7: memref<1x8x32xbf16, #tpu.memory_space<vmem>>) attributes {dimension_semantics = [#tpu.dimension_semantics<parallel>], iteration_bounds = array<i64: 2>, scalar_prefetch = 2 : i64, scratch_operands = 0 : i64, tpu.core_type = #tpu.core_type<tc>, window_params = [{transform_indices = @transform_0, window_bounds = array<i64: 1, 8, 32>}, {transform_indices = @transform_1, window_bounds = array<i64: 1, 8, 32>}, {transform_indices = @transform_2, window_bounds = array<i64: 1, 8, 32>}, {transform_indices = @transform_3, window_bounds = array<i64: 1, 8, 32>}, {transform_indices = @transform_4, window_bounds = array<i64: 1, 8, 32>}]} {
    %c0 = arith.constant 0 : index
    %c0_0 = arith.constant 0 : index
    %c0_1 = arith.constant 0 : index
    %0 = vector.load %arg3[%c0, %c0_0, %c0_1] : memref<1x8x32xbf16, #tpu.memory_space<vmem>>, vector<1x8x32xbf16>
    %1 = vector.shape_cast %0 : vector<1x8x32xbf16> to vector<8x32xbf16>
    %c0_2 = arith.constant 0 : index
    %c0_3 = arith.constant 0 : index
    %c0_4 = arith.constant 0 : index
    %2 = vector.load %arg4[%c0_2, %c0_3, %c0_4] : memref<1x8x32xbf16, #tpu.memory_space<vmem>>, vector<1x8x32xbf16>
    %3 = vector.shape_cast %2 : vector<1x8x32xbf16> to vector<8x32xbf16>
    "tpu.trace_start"() <{level = 10 : i32, message = "pd,qd->pq"}> : () -> ()
    %cst = arith.constant dense<0.000000e+00> : vector<8x8xf32>
    %4 = tpu.matmul %1, %3, %cst {dimension_numbers = #tpu.dot_dimension_numbers<[1], [1], [0], [0], [0, 0, 1, 0], [], []>} : vector<8x32xbf16>, vector<8x32xbf16>, vector<8x8xf32> -> vector<8x8xf32>
    "tpu.trace_stop"() : () -> ()
    %5 = tpu.iota {dimensions = array<i32: 0>} : vector<8x8xi32>
    %6 = tpu.iota {dimensions = array<i32: 1>} : vector<8x8xi32>
    %7 = arith.index_cast %arg0 : i32 to index
    %8 = memref.load %arg1[%7] : memref<2xi32, #tpu.memory_space<smem>>
    %9 = vector.broadcast %8 : i32 to vector<8x8xi32>
    %10 = arith.cmpi slt, %5, %9 : vector<8x8xi32>
    %11 = arith.index_cast %arg0 : i32 to index
    %12 = memref.load %arg2[%11] : memref<2xi32, #tpu.memory_space<smem>>
    %13 = vector.broadcast %12 : i32 to vector<8x8xi32>
    %14 = arith.cmpi slt, %6, %13 : vector<8x8xi32>
    %15 = arith.andi %10, %14 : vector<8x8xi1>
    %cst_5 = arith.constant 1.000000e+09 : f32
    %16 = vector.broadcast %cst_5 : f32 to vector<8x8xf32>
    %17 = arith.subf %4, %16 : vector<8x8xf32>
    %18 = arith.select %15, %4, %17 : vector<8x8xi1>, vector<8x8xf32>
    %cst_6 = arith.constant dense<0xFF800000> : vector<8xf32>
    %19 = vector.multi_reduction <maximumf>, %18, %cst_6 [0] : vector<8x8xf32> to vector<8xf32>
    %20 = vector.shape_cast %19 : vector<8xf32> to vector<1x8xf32>
    %21 = vector.broadcast %20 : vector<1x8xf32> to vector<8x8xf32>
    %22 = arith.subf %18, %21 : vector<8x8xf32>
    %23 = math.exp %22 : vector<8x8xf32>
    %cst_7 = arith.constant dense<0.000000e+00> : vector<8xf32>
    %24 = vector.multi_reduction <add>, %23, %cst_7 [0] : vector<8x8xf32> to vector<8xf32>
    %25 = vector.shape_cast %24 : vector<8xf32> to vector<1x8xf32>
    %26 = tpu.reciprocal %25 {approx = true} : vector<1x8xf32> -> vector<1x8xf32>
    %27 = vector.broadcast %26 : vector<1x8xf32> to vector<8x8xf32>
    %28 = arith.mulf %23, %27 : vector<8x8xf32>
    %cst_8 = arith.constant 0.000000e+00 : f32
    %29 = vector.broadcast %cst_8 : f32 to vector<8x8xf32>
    %30 = arith.select %14, %28, %29 : vector<8x8xi1>, vector<8x8xf32>
    %cst_9 = arith.constant dense<0xFF800000> : vector<8xf32>
    %31 = vector.multi_reduction <maximumf>, %18, %cst_9 [1] : vector<8x8xf32> to vector<8xf32>
    %32 = vector.shape_cast %31 : vector<8xf32> to vector<8x1xf32>
    %33 = vector.broadcast %32 : vector<8x1xf32> to vector<8x8xf32>
    %34 = arith.subf %18, %33 : vector<8x8xf32>
    %35 = math.exp %34 : vector<8x8xf32>
    %cst_10 = arith.constant dense<0.000000e+00> : vector<8xf32>
    %36 = vector.multi_reduction <add>, %35, %cst_10 [1] : vector<8x8xf32> to vector<8xf32>
    %37 = vector.shape_cast %36 : vector<8xf32> to vector<8x1xf32>
    %38 = tpu.reciprocal %37 {approx = true} : vector<8x1xf32> -> vector<8x1xf32>
    %39 = vector.broadcast %38 : vector<8x1xf32> to vector<8x8xf32>
    %40 = arith.mulf %35, %39 : vector<8x8xf32>
    %cst_11 = arith.constant 0.000000e+00 : f32
    %41 = vector.broadcast %cst_11 : f32 to vector<8x8xf32>
    %42 = arith.select %10, %40, %41 : vector<8x8xi1>, vector<8x8xf32>
    %43 = arith.truncf %30 : vector<8x8xf32> to vector<8x8xbf16>
    %44 = arith.truncf %42 : vector<8x8xf32> to vector<8x8xbf16>
    "tpu.trace_start"() <{level = 10 : i32, message = "pq,pd->qd"}> : () -> ()
    %cst_12 = arith.constant dense<0.000000e+00> : vector<8x32xf32>
    %45 = tpu.matmul %43, %1, %cst_12 {dimension_numbers = #tpu.dot_dimension_numbers<[0], [0], [1], [1], [0, 1, 1, 1], [], []>} : vector<8x8xbf16>, vector<8x32xbf16>, vector<8x32xf32> -> vector<8x32xf32>
    "tpu.trace_stop"() : () -> ()
    %46 = arith.truncf %45 : vector<8x32xf32> to vector<8x32xbf16>
    "tpu.trace_start"() <{level = 10 : i32, message = "pq,qd->pd"}> : () -> ()
    %cst_13 = arith.constant dense<0.000000e+00> : vector<8x32xf32>
    %47 = tpu.matmul %44, %3, %cst_13 {dimension_numbers = #tpu.dot_dimension_numbers<[1], [0], [0], [1], [0, 0, 1, 1], [], []>} : vector<8x8xbf16>, vector<8x32xbf16>, vector<8x32xf32> -> vector<8x32xf32>
    %cst_14 = arith.constant dense<0.000000e+00> : vector<8x32xf32>
    %48 = tpu.matmul %44, %46, %cst_14 {dimension_numbers = #tpu.dot_dimension_numbers<[1], [0], [0], [1], [0, 0, 1, 1], [], []>} : vector<8x8xbf16>, vector<8x32xbf16>, vector<8x32xf32> -> vector<8x32xf32>
    "tpu.trace_stop"() : () -> ()
    %49 = arith.truncf %47 : vector<8x32xf32> to vector<8x32xbf16>
    %c0_15 = arith.constant 0 : index
    %c0_16 = arith.constant 0 : index
    %c0_17 = arith.constant 0 : index
    %50 = vector.load %arg5[%c0_15, %c0_16, %c0_17] : memref<1x8x32xbf16, #tpu.memory_space<vmem>>, vector<1x8x32xbf16>
    %51 = vector.shape_cast %50 : vector<1x8x32xbf16> to vector<8x32xbf16>
    %52 = vector.shape_cast %49 : vector<8x32xbf16> to vector<1x8x32xbf16>
    tpu.vector_store %arg5[%c0_15, %c0_16, %c0_17], %52 {strides = array<i32>} : memref<1x8x32xbf16, #tpu.memory_space<vmem>>, vector<1x8x32xbf16>,
    %c0_18 = arith.constant 0 : index
    %c0_19 = arith.constant 0 : index
    %c0_20 = arith.constant 0 : index
    %53 = vector.load %arg6[%c0_18, %c0_19, %c0_20] : memref<1x8x32xbf16, #tpu.memory_space<vmem>>, vector<1x8x32xbf16>
    %54 = vector.shape_cast %53 : vector<1x8x32xbf16> to vector<8x32xbf16>
    %55 = vector.shape_cast %46 : vector<8x32xbf16> to vector<1x8x32xbf16>
    tpu.vector_store %arg6[%c0_18, %c0_19, %c0_20], %55 {strides = array<i32>} : memref<1x8x32xbf16, #tpu.memory_space<vmem>>, vector<1x8x32xbf16>,
    %56 = arith.truncf %48 : vector<8x32xf32> to vector<8x32xbf16>
    %c0_21 = arith.constant 0 : index
    %c0_22 = arith.constant 0 : index
    %c0_23 = arith.constant 0 : index
    %57 = vector.load %arg7[%c0_21, %c0_22, %c0_23] : memref<1x8x32xbf16, #tpu.memory_space<vmem>>, vector<1x8x32xbf16>
    %58 = vector.shape_cast %57 : vector<1x8x32xbf16> to vector<8x32xbf16>
    %59 = vector.shape_cast %56 : vector<8x32xbf16> to vector<1x8x32xbf16>
    tpu.vector_store %arg7[%c0_21, %c0_22, %c0_23], %59 {strides = array<i32>} : memref<1x8x32xbf16, #tpu.memory_space<vmem>>, vector<1x8x32xbf16>,
    return
  }
  func.func @transform_0(%arg0: i32, %arg1: memref<2xi32, #tpu.memory_space<smem>>, %arg2: memref<2xi32, #tpu.memory_space<smem>>) -> (i32, i32, i32) {
    %c0_i32 = arith.constant 0 : i32
    %c0_i32_0 = arith.constant 0 : i32
    %c0_i32_1 = arith.constant 0 : i32
    return %arg0, %c0_i32, %c0_i32_0 : i32, i32, i32
  }
  func.func @transform_1(%arg0: i32, %arg1: memref<2xi32, #tpu.memory_space<smem>>, %arg2: memref<2xi32, #tpu.memory_space<smem>>) -> (i32, i32, i32) {
    %c0_i32 = arith.constant 0 : i32
    %c0_i32_0 = arith.constant 0 : i32
    %c0_i32_1 = arith.constant 0 : i32
    return %arg0, %c0_i32, %c0_i32_0 : i32, i32, i32
  }
  func.func @transform_2(%arg0: i32, %arg1: memref<2xi32, #tpu.memory_space<smem>>, %arg2: memref<2xi32, #tpu.memory_space<smem>>) -> (i32, i32, i32) {
    %c0_i32 = arith.constant 0 : i32
    %c0_i32_0 = arith.constant 0 : i32
    %c0_i32_1 = arith.constant 0 : i32
    return %arg0, %c0_i32, %c0_i32_0 : i32, i32, i32
  }
  func.func @transform_3(%arg0: i32, %arg1: memref<2xi32, #tpu.memory_space<smem>>, %arg2: memref<2xi32, #tpu.memory_space<smem>>) -> (i32, i32, i32) {
    %c0_i32 = arith.constant 0 : i32
    %c0_i32_0 = arith.constant 0 : i32
    %c0_i32_1 = arith.constant 0 : i32
    return %arg0, %c0_i32, %c0_i32_0 : i32, i32, i32
  }
  func.func @transform_4(%arg0: i32, %arg1: memref<2xi32, #tpu.memory_space<smem>>, %arg2: memref<2xi32, #tpu.memory_space<smem>>) -> (i32, i32, i32) {
    %c0_i32 = arith.constant 0 : i32
    %c0_i32_0 = arith.constant 0 : i32
    %c0_i32_1 = arith.constant 0 : i32
    return %arg0, %c0_i32, %c0_i32_0 : i32, i32, i32
  }
}

module attributes {stable_mosaic.version = 11 : i64} {
  func.func @kernel(%arg0: i32, %arg1: i32, %arg2: memref<16x192xbf16, #tpu.memory_space<vmem>>, %arg3: memref<192x128xbf16, #tpu.memory_space<vmem>>, %arg4: memref<1x128xf32, #tpu.memory_space<vmem>>, %arg5: memref<16x128xbf16, #tpu.memory_space<vmem>>, %arg6: memref<16x128xf32, #tpu.memory_space<vmem>>) attributes {dimension_semantics = [#tpu.dimension_semantics<parallel>, #tpu.dimension_semantics<arbitrary>], iteration_bounds = array<i64: 1, 1>, scalar_prefetch = 0 : i64, scratch_operands = 1 : i64, tpu.core_type = #tpu.core_type<tc>, window_params = [{transform_indices = @transform_0, window_bounds = array<i64: 16, 192>}, {transform_indices = @transform_1, window_bounds = array<i64: 192, 128>}, {pipeline_mode = #tpu.pipeline_mode<synchronous>, transform_indices = @transform_2, window_bounds = array<i64: 1, 128>}, {transform_indices = @transform_3, window_bounds = array<i64: 16, 128>}]} {
    %c0_i32 = arith.constant 0 : i32
    %0 = arith.cmpi eq, %arg1, %c0_i32 : i32
    %1 = arith.extui %0 : i1 to i32
    %c0_i32_0 = arith.constant 0 : i32
    %2 = arith.cmpi ne, %1, %c0_i32_0 : i32
    scf.if %2 {
      %cst_10 = arith.constant 0.000000e+00 : f32
      %12 = vector.broadcast %cst_10 : f32 to vector<16x128xf32>
      %c0_11 = arith.constant 0 : index
      %c0_12 = arith.constant 0 : index
      %13 = vector.load %arg6[%c0_11, %c0_12] : memref<16x128xf32, #tpu.memory_space<vmem>>, vector<16x128xf32>
      tpu.vector_store %arg6[%c0_11, %c0_12], %12 {strides = array<i32>} : memref<16x128xf32, #tpu.memory_space<vmem>>, vector<16x128xf32>,
    } else {
    }
    %c0 = arith.constant 0 : index
    %c0_1 = arith.constant 0 : index
    %3 = vector.load %arg6[%c0, %c0_1] : memref<16x128xf32, #tpu.memory_space<vmem>>, vector<16x128xf32>
    %c0_2 = arith.constant 0 : index
    %c0_3 = arith.constant 0 : index
    %4 = vector.load %arg2[%c0_2, %c0_3] : memref<16x192xbf16, #tpu.memory_space<vmem>>, vector<16x192xbf16>
    %c0_4 = arith.constant 0 : index
    %c0_5 = arith.constant 0 : index
    %5 = vector.load %arg3[%c0_4, %c0_5] : memref<192x128xbf16, #tpu.memory_space<vmem>>, vector<192x128xbf16>
    %cst = arith.constant dense<0.000000e+00> : vector<16x128xf32>
    %6 = tpu.matmul %4, %5, %cst {dimension_numbers = #tpu.dot_dimension_numbers<[1], [0], [0], [1], [0, 0, 1, 1], [], []>} : vector<16x192xbf16>, vector<192x128xbf16>, vector<16x128xf32> -> vector<16x128xf32>
    %7 = arith.addf %3, %6 : vector<16x128xf32>
    %c0_6 = arith.constant 0 : index
    %c0_7 = arith.constant 0 : index
    %8 = vector.load %arg6[%c0_6, %c0_7] : memref<16x128xf32, #tpu.memory_space<vmem>>, vector<16x128xf32>
    tpu.vector_store %arg6[%c0_6, %c0_7], %7 {strides = array<i32>} : memref<16x128xf32, #tpu.memory_space<vmem>>, vector<16x128xf32>,
    %c0_i32_8 = arith.constant 0 : i32
    %9 = arith.cmpi eq, %arg1, %c0_i32_8 : i32
    %10 = arith.extui %9 : i1 to i32
    %c0_i32_9 = arith.constant 0 : i32
    %11 = arith.cmpi ne, %10, %c0_i32_9 : i32
    scf.if %11 {
      %c0_10 = arith.constant 0 : index
      %c0_11 = arith.constant 0 : index
      %12 = vector.load %arg6[%c0_10, %c0_11] : memref<16x128xf32, #tpu.memory_space<vmem>>, vector<16x128xf32>
      %c0_12 = arith.constant 0 : index
      %c0_13 = arith.constant 0 : index
      %13 = vector.load %arg4[%c0_12, %c0_13] : memref<1x128xf32, #tpu.memory_space<vmem>>, vector<1x128xf32>
      %14 = vector.broadcast %13 : vector<1x128xf32> to vector<16x128xf32>
      %15 = arith.addf %12, %14 : vector<16x128xf32>
      %16 = arith.truncf %15 : vector<16x128xf32> to vector<16x128xbf16>
      %c0_14 = arith.constant 0 : index
      %c0_15 = arith.constant 0 : index
      %17 = vector.load %arg5[%c0_14, %c0_15] : memref<16x128xbf16, #tpu.memory_space<vmem>>, vector<16x128xbf16>
      tpu.vector_store %arg5[%c0_14, %c0_15], %16 {strides = array<i32>} : memref<16x128xbf16, #tpu.memory_space<vmem>>, vector<16x128xbf16>,
    } else {
    }
    return
  }
  func.func @transform_0(%arg0: i32, %arg1: i32) -> (i32, i32) {
    %c0_i32 = arith.constant 0 : i32
    return %arg0, %arg1 : i32, i32
  }
  func.func @transform_1(%arg0: i32, %arg1: i32) -> (i32, i32) {
    %c0_i32 = arith.constant 0 : i32
    %c0_i32_0 = arith.constant 0 : i32
    return %arg1, %c0_i32 : i32, i32
  }
  func.func @transform_2(%arg0: i32, %arg1: i32) -> (i32, i32) {
    %c0_i32 = arith.constant 0 : i32
    %c0_i32_0 = arith.constant 0 : i32
    %c0_i32_1 = arith.constant 0 : i32
    return %c0_i32, %c0_i32_0 : i32, i32
  }
  func.func @transform_3(%arg0: i32, %arg1: i32) -> (i32, i32) {
    %c0_i32 = arith.constant 0 : i32
    %c0_i32_0 = arith.constant 0 : i32
    return %arg0, %c0_i32 : i32, i32
  }
}

module attributes {stable_mosaic.version = 11 : i64} {
  func.func @kernel(%arg0: i32, %arg1: i32, %arg2: memref<16x32xbf16, #tpu.memory_space<vmem>>, %arg3: memref<32x128xbf16, #tpu.memory_space<vmem>>, %arg4: memref<1x128xf32, #tpu.memory_space<vmem>>, %arg5: memref<16x128xbf16, #tpu.memory_space<vmem>>, %arg6: memref<16x128xf32, #tpu.memory_space<vmem>>) attributes {dimension_semantics = [#tpu.dimension_semantics<parallel>, #tpu.dimension_semantics<arbitrary>], iteration_bounds = array<i64: 1, 1>, scalar_prefetch = 0 : i64, scratch_operands = 1 : i64, tpu.core_type = #tpu.core_type<tc>, window_params = [{transform_indices = @transform_0, window_bounds = array<i64: 16, 32>}, {transform_indices = @transform_1, window_bounds = array<i64: 32, 128>}, {pipeline_mode = #tpu.pipeline_mode<synchronous>, transform_indices = @transform_2, window_bounds = array<i64: 1, 128>}, {transform_indices = @transform_3, window_bounds = array<i64: 16, 128>}]} {
    %c0_i32 = arith.constant 0 : i32
    %0 = arith.cmpi eq, %arg1, %c0_i32 : i32
    %1 = arith.extui %0 : i1 to i32
    %c0_i32_0 = arith.constant 0 : i32
    %2 = arith.cmpi ne, %1, %c0_i32_0 : i32
    scf.if %2 {
      %cst_10 = arith.constant 0.000000e+00 : f32
      %12 = vector.broadcast %cst_10 : f32 to vector<16x128xf32>
      %c0_11 = arith.constant 0 : index
      %c0_12 = arith.constant 0 : index
      %13 = vector.load %arg6[%c0_11, %c0_12] : memref<16x128xf32, #tpu.memory_space<vmem>>, vector<16x128xf32>
      tpu.vector_store %arg6[%c0_11, %c0_12], %12 {strides = array<i32>} : memref<16x128xf32, #tpu.memory_space<vmem>>, vector<16x128xf32>,
    } else {
    }
    %c0 = arith.constant 0 : index
    %c0_1 = arith.constant 0 : index
    %3 = vector.load %arg6[%c0, %c0_1] : memref<16x128xf32, #tpu.memory_space<vmem>>, vector<16x128xf32>
    %c0_2 = arith.constant 0 : index
    %c0_3 = arith.constant 0 : index
    %4 = vector.load %arg2[%c0_2, %c0_3] : memref<16x32xbf16, #tpu.memory_space<vmem>>, vector<16x32xbf16>
    %c0_4 = arith.constant 0 : index
    %c0_5 = arith.constant 0 : index
    %5 = vector.load %arg3[%c0_4, %c0_5] : memref<32x128xbf16, #tpu.memory_space<vmem>>, vector<32x128xbf16>
    %cst = arith.constant dense<0.000000e+00> : vector<16x128xf32>
    %6 = tpu.matmul %4, %5, %cst {dimension_numbers = #tpu.dot_dimension_numbers<[1], [0], [0], [1], [0, 0, 1, 1], [], []>} : vector<16x32xbf16>, vector<32x128xbf16>, vector<16x128xf32> -> vector<16x128xf32>
    %7 = arith.addf %3, %6 : vector<16x128xf32>
    %c0_6 = arith.constant 0 : index
    %c0_7 = arith.constant 0 : index
    %8 = vector.load %arg6[%c0_6, %c0_7] : memref<16x128xf32, #tpu.memory_space<vmem>>, vector<16x128xf32>
    tpu.vector_store %arg6[%c0_6, %c0_7], %7 {strides = array<i32>} : memref<16x128xf32, #tpu.memory_space<vmem>>, vector<16x128xf32>,
    %c0_i32_8 = arith.constant 0 : i32
    %9 = arith.cmpi eq, %arg1, %c0_i32_8 : i32
    %10 = arith.extui %9 : i1 to i32
    %c0_i32_9 = arith.constant 0 : i32
    %11 = arith.cmpi ne, %10, %c0_i32_9 : i32
    scf.if %11 {
      %c0_10 = arith.constant 0 : index
      %c0_11 = arith.constant 0 : index
      %12 = vector.load %arg6[%c0_10, %c0_11] : memref<16x128xf32, #tpu.memory_space<vmem>>, vector<16x128xf32>
      %c0_12 = arith.constant 0 : index
      %c0_13 = arith.constant 0 : index
      %13 = vector.load %arg4[%c0_12, %c0_13] : memref<1x128xf32, #tpu.memory_space<vmem>>, vector<1x128xf32>
      %14 = vector.broadcast %13 : vector<1x128xf32> to vector<16x128xf32>
      %15 = arith.addf %12, %14 : vector<16x128xf32>
      %16 = arith.truncf %15 : vector<16x128xf32> to vector<16x128xbf16>
      %c0_14 = arith.constant 0 : index
      %c0_15 = arith.constant 0 : index
      %17 = vector.load %arg5[%c0_14, %c0_15] : memref<16x128xbf16, #tpu.memory_space<vmem>>, vector<16x128xbf16>
      tpu.vector_store %arg5[%c0_14, %c0_15], %16 {strides = array<i32>} : memref<16x128xbf16, #tpu.memory_space<vmem>>, vector<16x128xbf16>,
    } else {
    }
    return
  }
  func.func @transform_0(%arg0: i32, %arg1: i32) -> (i32, i32) {
    %c0_i32 = arith.constant 0 : i32
    return %arg0, %arg1 : i32, i32
  }
  func.func @transform_1(%arg0: i32, %arg1: i32) -> (i32, i32) {
    %c0_i32 = arith.constant 0 : i32
    %c0_i32_0 = arith.constant 0 : i32
    return %arg1, %c0_i32 : i32, i32
  }
  func.func @transform_2(%arg0: i32, %arg1: i32) -> (i32, i32) {
    %c0_i32 = arith.constant 0 : i32
    %c0_i32_0 = arith.constant 0 : i32
    %c0_i32_1 = arith.constant 0 : i32
    return %c0_i32, %c0_i32_0 : i32, i32
  }
  func.func @transform_3(%arg0: i32, %arg1: i32) -> (i32, i32) {
    %c0_i32 = arith.constant 0 : i32
    %c0_i32_0 = arith.constant 0 : i32
    return %arg0, %c0_i32 : i32, i32
  }
}

module attributes {stable_mosaic.version = 11 : i64} {
  func.func @kernel(%arg0: i32, %arg1: i32, %arg2: memref<16x32xbf16, #tpu.memory_space<vmem>>, %arg3: memref<32x32xbf16, #tpu.memory_space<vmem>>, %arg4: memref<1x32xf32, #tpu.memory_space<vmem>>, %arg5: memref<16x32xf32, #tpu.memory_space<vmem>>, %arg6: memref<16x32xf32, #tpu.memory_space<vmem>>) attributes {dimension_semantics = [#tpu.dimension_semantics<parallel>, #tpu.dimension_semantics<arbitrary>], iteration_bounds = array<i64: 1, 1>, scalar_prefetch = 0 : i64, scratch_operands = 1 : i64, tpu.core_type = #tpu.core_type<tc>, window_params = [{transform_indices = @transform_0, window_bounds = array<i64: 16, 32>}, {transform_indices = @transform_1, window_bounds = array<i64: 32, 32>}, {pipeline_mode = #tpu.pipeline_mode<synchronous>, transform_indices = @transform_2, window_bounds = array<i64: 1, 32>}, {transform_indices = @transform_3, window_bounds = array<i64: 16, 32>}]} {
    %c0_i32 = arith.constant 0 : i32
    %0 = arith.cmpi eq, %arg1, %c0_i32 : i32
    %1 = arith.extui %0 : i1 to i32
    %c0_i32_0 = arith.constant 0 : i32
    %2 = arith.cmpi ne, %1, %c0_i32_0 : i32
    scf.if %2 {
      %cst_10 = arith.constant 0.000000e+00 : f32
      %12 = vector.broadcast %cst_10 : f32 to vector<16x32xf32>
      %c0_11 = arith.constant 0 : index
      %c0_12 = arith.constant 0 : index
      %13 = vector.load %arg6[%c0_11, %c0_12] : memref<16x32xf32, #tpu.memory_space<vmem>>, vector<16x32xf32>
      tpu.vector_store %arg6[%c0_11, %c0_12], %12 {strides = array<i32>} : memref<16x32xf32, #tpu.memory_space<vmem>>, vector<16x32xf32>,
    } else {
    }
    %c0 = arith.constant 0 : index
    %c0_1 = arith.constant 0 : index
    %3 = vector.load %arg6[%c0, %c0_1] : memref<16x32xf32, #tpu.memory_space<vmem>>, vector<16x32xf32>
    %c0_2 = arith.constant 0 : index
    %c0_3 = arith.constant 0 : index
    %4 = vector.load %arg2[%c0_2, %c0_3] : memref<16x32xbf16, #tpu.memory_space<vmem>>, vector<16x32xbf16>
    %c0_4 = arith.constant 0 : index
    %c0_5 = arith.constant 0 : index
    %5 = vector.load %arg3[%c0_4, %c0_5] : memref<32x32xbf16, #tpu.memory_space<vmem>>, vector<32x32xbf16>
    %cst = arith.constant dense<0.000000e+00> : vector<16x32xf32>
    %6 = tpu.matmul %4, %5, %cst {dimension_numbers = #tpu.dot_dimension_numbers<[1], [0], [0], [1], [0, 0, 1, 1], [], []>} : vector<16x32xbf16>, vector<32x32xbf16>, vector<16x32xf32> -> vector<16x32xf32>
    %7 = arith.addf %3, %6 : vector<16x32xf32>
    %c0_6 = arith.constant 0 : index
    %c0_7 = arith.constant 0 : index
    %8 = vector.load %arg6[%c0_6, %c0_7] : memref<16x32xf32, #tpu.memory_space<vmem>>, vector<16x32xf32>
    tpu.vector_store %arg6[%c0_6, %c0_7], %7 {strides = array<i32>} : memref<16x32xf32, #tpu.memory_space<vmem>>, vector<16x32xf32>,
    %c0_i32_8 = arith.constant 0 : i32
    %9 = arith.cmpi eq, %arg1, %c0_i32_8 : i32
    %10 = arith.extui %9 : i1 to i32
    %c0_i32_9 = arith.constant 0 : i32
    %11 = arith.cmpi ne, %10, %c0_i32_9 : i32
    scf.if %11 {
      %c0_10 = arith.constant 0 : index
      %c0_11 = arith.constant 0 : index
      %12 = vector.load %arg6[%c0_10, %c0_11] : memref<16x32xf32, #tpu.memory_space<vmem>>, vector<16x32xf32>
      %c0_12 = arith.constant 0 : index
      %c0_13 = arith.constant 0 : index
      %13 = vector.load %arg4[%c0_12, %c0_13] : memref<1x32xf32, #tpu.memory_space<vmem>>, vector<1x32xf32>
      %14 = vector.broadcast %13 : vector<1x32xf32> to vector<16x32xf32>
      %15 = arith.addf %12, %14 : vector<16x32xf32>
      %c0_14 = arith.constant 0 : index
      %c0_15 = arith.constant 0 : index
      %16 = vector.load %arg5[%c0_14, %c0_15] : memref<16x32xf32, #tpu.memory_space<vmem>>, vector<16x32xf32>
      tpu.vector_store %arg5[%c0_14, %c0_15], %15 {strides = array<i32>} : memref<16x32xf32, #tpu.memory_space<vmem>>, vector<16x32xf32>,
    } else {
    }
    return
  }
  func.func @transform_0(%arg0: i32, %arg1: i32) -> (i32, i32) {
    %c0_i32 = arith.constant 0 : i32
    return %arg0, %arg1 : i32, i32
  }
  func.func @transform_1(%arg0: i32, %arg1: i32) -> (i32, i32) {
    %c0_i32 = arith.constant 0 : i32
    %c0_i32_0 = arith.constant 0 : i32
    return %arg1, %c0_i32 : i32, i32
  }
  func.func @transform_2(%arg0: i32, %arg1: i32) -> (i32, i32) {
    %c0_i32 = arith.constant 0 : i32
    %c0_i32_0 = arith.constant 0 : i32
    %c0_i32_1 = arith.constant 0 : i32
    return %c0_i32, %c0_i32_0 : i32, i32
  }
  func.func @transform_3(%arg0: i32, %arg1: i32) -> (i32, i32) {
    %c0_i32 = arith.constant 0 : i32
    %c0_i32_0 = arith.constant 0 : i32
    return %arg0, %c0_i32 : i32, i32
  }
}

</mosaic_0001>

<bundles_post_ra>
// kernel: coattention_forward.15
= control target key start
LH: loop header
LB: loop body
LE: loop exit
PB: predicated region body
PF: predicated region fallthrough
CT: control target
= control target key end

     0   :  { %vm57_vm0 = vcmask 261120   ;;  %s195_s1 = inlined_call_operand.vmem [shape: bf16[32,128], index: 1, kind: input, shape index: {}]   ;;  %s196_s2 = inlined_call_operand.vmem [shape: f32[1,128], index: 2, kind: input, shape index: {}]   ;;  %s197_s0 = inlined_call_operand.vmem [shape: bf16[32,32], index: 0, kind: input, shape index: {}]   ;;  %s198_s3 = inlined_call_operand.vmem [shape: bf16[32,128], index: 3, kind: output, shape index: {}]  }
   0x1   :  { %v139_v0 = vld [vmem:[%s195_s1 + $0x8] sm:$0xff]  ;;  %v138_v1 = vld [vmem:[%s195_s1] sm:$0xff] }
   0x2   :  { %70 = vmatpush.bf16.msra.mxu0 %v139_v0  ;;  %151 = vmatpush.bf16.msra.mxu1 %v139_v0  ;;  %v136_v2 = vld [vmem:[%s197_s0] sm:$0xff]  ;;  %v137_v3 = vld [vmem:[%s197_s0 + $0x8] sm:$0xff] }
   0x3   :  { %v153_v6 = vld [vmem:[%s196_s2] ss:$0 sm:$0xff] }
   0x6   :  { %71 = vmatpush.bf16.msra.mxu0 %v138_v1  ;;  %152 = vmatpush.bf16.msra.mxu1 %v138_v1 }
   0x9   :  { %134 = vmatmul.msk.bf16.vlgmr.msra.gmra.mxu0 %vm57_vm0, %v136_v2  ;;  %135 = vmatmul.msk.bf16.vlgmr.msra.gmra.mxu1 %vm57_vm0, %v137_v3 }
  0x86   :  { %v73_v4 = vpop.f32.mrf.mxu0  ;;  %v78_v5 = vpop.f32.mrf.mxu1 }
  0x87   :  { %v102_v9 = vadd.f32 %v153_v6, %v73_v4  ;;  %v104_v10 = vadd.f32 %v153_v6, %v78_v5 }
  0x8e   :  { %v75_v7 = vpop.f32.mrf.mxu0  ;;  %v80_v8 = vpop.f32.mrf.mxu1 }
  0x8f   :  { %v103_v11 = vadd.f32 %v153_v6, %v75_v7  ;;  %v105_v12 = vadd.f32 %v153_v6, %v80_v8 }
  0x91   :  { %v143_v13 = vpack.c.bf16 %v103_v11, %v102_v9  ;;  %v148_v14 = vpack.c.bf16 %v105_v12, %v104_v10 }
  0x93   :  { %144 = vst [vmem:[%s198_s3] sm:$0xff] %v143_v13  }
  0x94   :  { %150 = vst [vmem:[%s198_s3 + $0x8] sm:$0xff] %v148_v14  }

// kernel: coattention_forward.14
= control target key start
LH: loop header
LB: loop body
LE: loop exit
PB: predicated region body
PF: predicated region fallthrough
CT: control target
= control target key end

     0   :  { %s589_s27 = smov [#allocation3]   ;;  %s590_s28 = smov [#allocation4]   ;;  %s697_s0 = inlined_call_operand.vmem [shape: s32[2], index: 0, kind: input, shape index: {}]   ;;  %s698_s2 = inlined_call_operand.vmem [shape: bf16[2,8,32], index: 2, kind: input, shape index: {}]   ;;  %s699_s3 = inlined_call_operand.vmem [shape: bf16[2,8,32], index: 3, kind: input, shape index: {}]   ;;  %s700_s4 = inlined_call_operand.vmem [shape: bf16[2,8,32], index: 4, kind: output, shape index: {0}]   ;;  %s701_s5 = inlined_call_operand.vmem [shape: bf16[2,8,32], index: 5, kind: output, shape index: {1}]   ;;  %s702_s6 = inlined_call_operand.vmem [shape: bf16[2,8,32], index: 6, kind: output, shape index: {2}]   ;;  %s703_s1 = inlined_call_operand.vmem [shape: s32[2], index: 1, kind: input, shape index: {}]  }
   0x1   :  { %s13_s23 = sshll.u32 %s697_s0, 4  ;;  %s18_s26 = sshll.u32 %s703_s1, 4  ;;  %s14_s23 = int_to_ptr.vmem [resolvable:$true] %s13_s23  ;;  %s19_s26 = int_to_ptr.vmem [resolvable:$true] %s18_s26 }
   0x2   :  { %16 = dma.vmem_to_smem %s14_s23, 16, %s589_s27, [#allocation2] }
   0x3   :  { %21 = dma.vmem_to_smem %s19_s26, 16, %s590_s28, [#allocation2] }
   0x4   :  { %583 = dma.done.wait [#allocation2], 32 }
   0x5   :  { %584 = vsyncadd [#allocation2], 4294967264 }
   0x6   :  { %24 = sfence }
   0x7   :  { %s632_s29 = smov 0  }
   0x8 LB: > { %s519_s0 = sadd.s32 4294967295, %s587_s29   ;;  %p523_p0 = scmp.ge.s32.totalorder %s587_s29, 1  ;;  %s587_s29 = sphi %s632_s29, %s30_s29  }
   0x9   : > { %p190_p1 = scmp.lt.s32.totalorder %s587_s29, 3 }
   0xb   : > { %p191_p2 = pnand %p523_p0, %p190_p1 }
   0xc   : > { %p226_p3 = scmp.lt.s32.totalorder (!%p191_p2), %s519_s0, 1  ;;  %s273_s13 = sld [smem:[#allocation3 + %s519_s0]] (!%p191_p2) }
   0xd   : > { %194 = sbr.rel (%p191_p2) target bundleno = 718 (0x2ce), region = 28  ;;  %s276_s14 = sld [smem:[#allocation4 + %s519_s0]] (!%p191_p2) }
  0x12   : > { %s227_s1 = scalar_select %p226_p3, %s519_s0, 1  ;;  %vm249_vm0 = vcmask 261120   ;;  %v269_v3 = vlaneseq  ;;  %v274_v6 = vstv %s273_s13  ;;  %vm282_vm4 = vcmask 64512  }
  0x13   : > { %v277_v7 = vstv %s276_s14  ;;  %vm335_vm5 = vcmask 1043456   ;;  %vm387_vm6 = vcmask 257024  }
  0x14   : > { %s640_s30 = sshll.u32 %s227_s1, 2  ;;  %v270_v4 = vshrl.u32 %v269_v3, 7  ;;  %v272_v5 = vand.u32 127, %v269_v3 }
  0x15   : > { %s233_s9 = scalar_lea.vmem %s699_s3, %s640_s30  ;;  %s229_s12 = scalar_lea.vmem %s698_s2, %s640_s30 }
  0x16   : > { %v646_v0 = vld [vmem:[%s233_s9] sm:$0xf]  ;;  %vm653_vm1 = vcmp.lt.s32.totalorder %v270_v4, %v274_v6  ;;  %vm657_vm2 = vcmp.lt.s32.totalorder %v272_v5, %v277_v7  ;;  %s241_s17 = scalar_lea.vmem %s701_s5, %s640_s30  ;;  %s237_s20 = scalar_lea.vmem %s700_s4, %s640_s30 }
  0x17   : > { %v254_v1 = vsel %vm249_vm0, %v646_v0, 0  ;;  %v247_v2 = vld [vmem:[%s229_s12] sm:$0xf]  ;;  %vm279_vm3 = vmand %vm653_vm1, %vm657_vm2  ;;  %v355_v46 = vsel %vm335_vm5, %v646_v0, 0  ;;  %s245_s23 = scalar_lea.vmem %s702_s6, %s640_s30 }
  0x18   : > { %263 = vmatpush.bf16.xpose.msra.mxu0 %v254_v1  ;;  %v336_v35 = vsel %vm335_vm5, %v247_v2, 0  ;;  %364 = vmatpush.bf16.msra.mxu2 %v355_v46 }
  0x19   : > { %345 = vmatpush.bf16.msra.mxu1 %v336_v35 }
  0x1f   : > { %529 = vmatmul.msk.bf16.vlgmr.msra.gmra.mxu0 %vm249_vm0, %v247_v2 }
  0x9c   : > { %v265_v10 = vpop.f32.mrf.mxu0 }
  0x9d   : > { %v530_v11 = vadd.f32 -1e+09, %v265_v10 }
  0x9f   : > { %v281_v12 = vsel %vm279_vm3, %v265_v10, %v530_v11 }
  0xa0   : > { %v283_v13 = vsel %vm282_vm4, %v281_v12, -inf }
  0xa1   : > { %v284_v14 = vrot.slane %v283_v13, 4 }
  0xa3   : > { %v285_v15 = vmax.f32 %v283_v13, %v284_v14 }
  0xa4   : > { %v267_v16 = vpop.f32.mrf.mxu0 }
  0xa5   : > { %v286_v17 = vrot.slane %v285_v15, 2 }
  0xa7   : > { %v287_v18 = vmax.f32 %v285_v15, %v286_v17 }
  0xa9   : > { %v288_v19 = vrot.slane %v287_v18, 1 }
  0xab   : > { %v289_v20 = vmax.f32 %v287_v18, %v288_v19 }
  0xad   : > { %v290_v21 = vsub.f32 %v281_v12, %v289_v20 }
  0xaf   : > { %v291_v22 = vmul.f32 1.442695, %v290_v21 }
  0xb1   : > { %547 = vpow2.f32 %v291_v22 }
  0xb7   : > { %v548_v23 = vpop.eup %547 }
  0xb8   : > { %v293_v24 = vsel %vm282_vm4, %v548_v23, 0.0 }
  0xb9   : > { %v294_v25 = vrot.slane %v293_v24, 4 }
  0xbb   : > { %v295_v26 = vadd.f32 %v294_v25, %v293_v24 }
  0xbd   : > { %v296_v27 = vrot.slane %v295_v26, 2 }
  0xbf   : > { %v297_v28 = vadd.f32 %v296_v27, %v295_v26 }
  0xc1   : > { %v298_v29 = vrot.slane %v297_v28, 1 }
  0xc3   : > { %v299_v30 = vadd.f32 %v298_v29, %v297_v28 }
  0xc5   : > { %549 = vrcp.f32 %v299_v30 }
  0xcb   : > { %v550_v31 = vpop.eup %549 }
  0xcc   : > { %v301_v32 = vmul.f32 %v550_v31, %v548_v23 }
  0xce   : > { %v302_v33 = vsel %vm657_vm2, %v301_v32, 0.0 }
  0xcf   : > { %v314_v34 = vpack.c.bf16 %v302_v33, %v302_v33 }
  0xd1   : > { %316 = vxpose.xlu0.c.b16.start.end [1/1] (short) (narrow) %v314_v34, 16 }
 0x142   : > { %303 = vmax.xlane.f32.xlu0 %v283_v13 }
 0x17d   : > { %v324_v36 = vpop.trf.xlu0 }
 0x17e   : > { %531 = vmatmul.msk.bf16.vlgmr.msra.gmra.mxu1 %vm282_vm4, %v324_v36 }
 0x1b5   : > { %v304_v37 = vpop.xlane.xlu0 %303 }
 0x1b6   : > { %v305_v38 = vsub.f32 %v281_v12, %v304_v37 }
 0x1b8   : > { %v306_v39 = vmul.f32 1.442695, %v305_v38 }
 0x1ba   : > { %551 = vpow2.f32 %v306_v39 }
 0x1c0   : > { %v552_v40 = vpop.eup %551 }
 0x1c1   : > { %v308_v41 = vsel %vm282_vm4, %v552_v40, 0.0 }
 0x1c2   : > { %309 = vadd.xlane.f32.xlu1 %v308_v41 }
 0x1fb   : > { %v347_v42 = vpop.f32.mrf.mxu1 }
 0x1fc   : > { %v351_v43 = vpack.c.bf16 %v347_v42, %v347_v42 }
 0x1fe   : > { %389 = vst.msk [vmem:[%s241_s17] sm:$0xf] %vm387_vm6, %v351_v43  ;;  %v371_v44 = vsel %vm335_vm5, %v351_v43, 0 }
 0x1ff   : > { %380 = vmatpush.bf16.msra.mxu3 %v371_v44 }
 0x203   : > { %v349_v45 = vpop.f32.mrf.mxu1 }
 0x235   : > { %v310_v47 = vpop.xlane.xlu1 %309 }
 0x236   : > { %553 = vrcp.f32 %v310_v47 }
 0x23c   : > { %v554_v48 = vpop.eup %553 }
 0x23d   : > { %v312_v49 = vmul.f32 %v554_v48, %v552_v40 }
 0x23f   : > { %v313_v50 = vsel %vm653_vm1, %v312_v49, 0.0 }
 0x240   : > { %v315_v51 = vpack.c.bf16 %v313_v50, %v313_v50 }
 0x242   : > { %532 = vmatmul.msk.bf16.vlgmr.msra.gmra.mxu2 %vm282_vm4, %v315_v51  ;;  %533 = vmatmul.msk.bf16.vlgmr.msra.gmra.mxu3 %vm282_vm4, %v315_v51 }
 0x2c5   : > { %v366_v52 = vpop.f32.mrf.mxu2  ;;  %v382_v53 = vpop.f32.mrf.mxu3 }
 0x2c6   : > { %v386_v54 = vpack.c.bf16 %v366_v52, %v366_v52  ;;  %v390_v55 = vpack.c.bf16 %v382_v53, %v382_v53 }
 0x2c8   : > { %388 = vst.msk [vmem:[%s237_s20] sm:$0xf] %vm387_vm6, %v386_v54 }
 0x2c9   : > { %391 = vst.msk [vmem:[%s245_s23] sm:$0xf] %vm387_vm6, %v390_v55 }
 0x2cd   : > { %v368_v56 = vpop.f32.mrf.mxu2  ;;  %v384_v57 = vpop.f32.mrf.mxu3 }
 0x2ce PF: > { %s30_s29 = sadd.s32 1, %s587_s29  }
 0x2cf   : > { %p27_p4 = scmp.ge.s32.totalorder %s30_s29, 4  }
 0x2d1   :  { %29 = sbr.rel (!%p27_p4) target bundleno = 8 (0x8), region = 85 }

// kernel: coattention_forward.16
= control target key start
LH: loop header
LB: loop body
LE: loop exit
PB: predicated region body
PF: predicated region fallthrough
CT: control target
= control target key end

     0   :  { %s786_s24 = smov 0   ;;  %s883_s0 = inlined_call_operand.vmem [shape: bf16[8,2,64], index: 0, kind: input, shape index: {}]   ;;  %s884_s1 = inlined_call_operand.vmem [shape: bf16[8,2,64], index: 1, kind: input, shape index: {}]   ;;  %s885_s2 = inlined_call_operand.vmem [shape: f32[8,2,1], index: 2, kind: input, shape index: {}, may-alias: {2,3}]   ;;  %s886_s3 = inlined_call_operand.vmem [shape: f32[8,2,1], index: 3, kind: input, shape index: {}, may-alias: {2,3}]   ;;  %s887_s4 = inlined_call_operand.vmem [shape: bf16[16,64], index: 4, kind: input, shape index: {}]   ;;  %s888_s5 = inlined_call_operand.vmem [shape: bf16[16,64], index: 5, kind: input, shape index: {}]   ;;  %s889_s6 = inlined_call_operand.vmem [shape: bf16[8,2,16], index: 6, kind: output, shape index: {0}]   ;;  %s890_s7 = inlined_call_operand.vmem [shape: bf16[8,2,16], index: 7, kind: output, shape index: {1}]  }
   0x1 LB: > { %s675_s25 = sadd.s32 4294967295, %s737_s24   ;;  %p679_p0 = scmp.ge.s32.totalorder %s737_s24, 1  ;;  %s737_s24 = sphi %s786_s24, %s18_s24  }
   0x2   : > { %p274_p1 = scmp.lt.s32.totalorder %s737_s24, 9 }
   0x4   : > { %p275_p2 = pnand %p679_p0, %p274_p1 }
   0x5   : > { %p319_p3 = scmp.lt.s32.totalorder (!%p275_p2), %s675_s25, 7  ;;  %s322_s26 = ssub.s32 (!%p275_p2), 7, %s675_s25 }
   0x6   : > { %278 = sbr.rel (%p275_p2) target bundleno = 673 (0x2a1), region = 44  ;;  %p323_p4 = scmp.lt.s32.totalorder (!%p275_p2), %s322_s26, 7 }
   0x7   : > { %p682_p5 = scmp.ne.s32.totalorder (!%p275_p2), %s675_s25, 0 }
   0xb   : > { %s794_s27 = scalar_select %p319_p3, %s675_s25, 7 }
   0xc   : > { %s892_s26 = smov (!%p323_p4, %s322_s26), 7  ;;  %349 = sbr.rel (%p682_p5) target bundleno = 22 (0x16), region = 48 }
   0xd   : > { %s321_s30 = scalar_lea.vmem %s883_s0, %s794_s27  ;;  %s680_s8 = sshll.u32 %s794_s27, 1 }
   0xe   : > { %s325_s11 = scalar_lea.vmem %s884_s1, %s892_s26  ;;  %s810_s14 = scalar_lea.vmem %s885_s2, %s680_s8 }
   0xf   : > { %s681_s15 = sshll.u32 %s892_s26, 1  ;;  %s339_s18 = scalar_lea.vmem %s889_s6, %s794_s27 }
  0x10   : > { %s820_s21 = scalar_lea.vmem %s886_s3, %s681_s15  ;;  %s343_s28 = scalar_lea.vmem %s890_s7, %s892_s26 }
  0x11   : > { %vm350_vm0 = vcmask 123904   ;;  %v739_v0 = vmov 0.0  }
  0x12   : > { %351 = vst.msk [vmem:[#allocation2] sm:$0x3] %vm350_vm0, %v739_v0 }
  0x13   : > { %352 = vst.msk [vmem:[#allocation3] sm:$0x3] %vm350_vm0, %v739_v0 }
  0x14   : > { %353 = vst.msk [vmem:[#allocation4] sm:$0x3] %vm350_vm0, %v739_v0 }
  0x15   : > { %354 = vst.msk [vmem:[#allocation5] sm:$0x3] %vm350_vm0, %v739_v0 }
  0x16 PF: > { %v695_v1 = vld [vmem:[%s887_s4] sm:$0xff]  ;;  %vm369_vm1 = vcmask 130048   ;;  %s740_s25 = smov 16   ;;  %s741_s17 = smov 96   ;;  %v743_v0 = vmov 0   ;;  %vm457_vm10 = vcmask 123904  }
  0x17   : > { %v696_v3 = vld [vmem:[%s888_s5] sm:$0xff]  ;;  %380 = vmatpush.bf16.msra.mxu0 %v695_v1  ;;  %713 = vset.pattern.permute.xlu1 %v743_v0  ;;  %vm462_vm11 = vcmask 122880  }
  0x18   : > { %488 = vmatpush.bf16.msra.mxu1 %v696_v3  ;;  %v355_v9 = vld [vmem:[%s321_s30] sm:$0x1]  ;;  %s742_s30 = smov 32   ;;  %712 = vset.pattern.permute.xlu2 %v743_v0 }
  0x19   : > { %v829_v2 = vld [vmem:[#allocation2] sm:$0x3]  ;;  %v359_v10 = vunpack.c.l.bf16 %v355_v9  ;;  %v464_v11 = vld [vmem:[%s325_s11] sm:$0x1]  ;;  %714 = vset.pattern.permute.xlu0 %v743_v0  ;;  %s744_s11 = smov 80  }
  0x1a   : > { %v360_v4 = vpack.c.bf16 %v829_v2, %v829_v2  ;;  %v838_v6 = vld [vmem:[#allocation3] sm:$0x3]  ;;  %v468_v15 = vunpack.c.l.bf16 %v464_v11  ;;  %v356_v63 = vld [vmem:[%s810_s14] sm:$0x3]  ;;  %s745_s14 = smov 112  }
  0x1b   : > { %v836_v5 = vld [vmem:[#allocation4] sm:$0x3]  ;;  %408 = vrot.lane.b32.xlu1 %v838_v6, %s740_s25  ;;  %v440_v1 = vsub.f32 1.0, %v356_v63  ;;  %v465_v3 = vld [vmem:[%s820_s21] sm:$0x3] }
  0x1c   : > { %v840_v7 = vld [vmem:[#allocation5] sm:$0x3]  ;;  %v469_v8 = vpack.c.bf16 %v836_v5, %v836_v5  ;;  %687 = vmatmul.msk.bf16.vlgmr.msra.gmra.mxu0 %vm369_vm1, %v360_v4  ;;  %v548_v4 = vsub.f32 1.0, %v465_v3 }
  0x1d   : > { %516 = vrot.lane.b32.xlu2 %v840_v7, %s740_s25 }
  0x1e   : > { %692 = vmatmul.msk.bf16.vlgmr.msra.gmra.mxu1 %vm369_vm1, %v469_v8 }
  0x77   : > { %v517_v53 = vpop.permute.xlu2 %516 }
  0x8d   : > { %v409_v57 = vpop.permute.xlu1 %408 }
  0x99   : > { %v382_v12 = vpop.f32.mrf.mxu0 }
  0x9a   : > { %v386_v14 = vadd.f32 %v382_v12, %v359_v10 }
  0x9b   : > { %v490_v13 = vpop.f32.mrf.mxu1 }
  0x9c   : > { %715 = vtanh.f32 %v386_v14  ;;  %v494_v16 = vadd.f32 %v490_v13, %v468_v15  ;;  %v387_v21 = vsub.f32 0.0, %v386_v14 }
  0x9e   : > { %717 = vtanh.f32 %v494_v16  ;;  %v388_v22 = vmul.f32 1.442695, %v387_v21  ;;  %v495_v23 = vsub.f32 0.0, %v494_v16 }
  0xa0   : > { %719 = vpow2.f32 %v388_v22  ;;  %v496_v24 = vmul.f32 1.442695, %v495_v23 }
  0xa1   : > { %v384_v17 = vpop.f32.mrf.mxu0 }
  0xa2   : > { %v716_v19 = vpop.eup %715  ;;  %721 = vpow2.f32 %v496_v24 }
  0xa3   : > { %v492_v18 = vpop.f32.mrf.mxu1  ;;  %413 = vrot.lane.b32.xlu0 %v716_v19, %s741_s17 }
  0xa4   : > { %v718_v20 = vpop.eup %717 }
  0xa6   : > { %v720_v25 = vpop.eup %719 }
  0xa7   : > { %v390_v26 = vadd.f32 1.0, %v720_v25 }
  0xa8   : > { %v722_v27 = vpop.eup %721 }
  0xa9   : > { %723 = vrcp.f32 %v390_v26  ;;  %v498_v28 = vadd.f32 1.0, %v722_v27  ;;  %v402_v37 = vand.u32 2147483648, %v390_v26  ;;  %vm396_vm3 = vweird.f32 %v390_v26 }
  0xaa   : > { %v400_v38 = vand.u32 2147483647, %v390_v26 }
  0xab   : > { %521 = vrot.lane.b32.xlu0 %v718_v20, %s741_s17  ;;  %725 = vrcp.f32 %v498_v28  ;;  %v403_v41 = vor.u32 1.1754944e-38, %v402_v37  ;;  %vm504_vm6 = vweird.f32 %v498_v28  ;;  %v510_v43 = vand.u32 2147483648, %v498_v28 }
  0xac   : > { %vm401_vm5 = vcmp.eq.f32.partialorder %v400_v38, 8.507059e+37  ;;  %v508_v46 = vand.u32 2147483647, %v498_v28 }
  0xad   : > { %v511_v48 = vor.u32 1.1754944e-38, %v510_v43 }
  0xae   : > { %vm509_vm9 = vcmp.eq.f32.partialorder %v508_v46, 8.507059e+37 }
  0xaf   : > { %v724_v29 = vpop.eup %723 }
  0xb0   : > { %v392_v30 = vmul.f32 %v724_v29, %v390_v26  ;;  %vm397_vm2 = vweird.f32 %v724_v29 }
  0xb1   : > { %v726_v32 = vpop.eup %725  ;;  %vm398_vm4 = vmor %vm396_vm3, %vm397_vm2 }
  0xb2   : > { %v393_v31 = vsub.f32 1.0, %v392_v30  ;;  %v500_v34 = vmul.f32 %v726_v32, %v498_v28  ;;  %vm505_vm7 = vweird.f32 %v726_v32 }
  0xb3   : > { %vm506_vm8 = vmor %vm504_vm6, %vm505_vm7 }
  0xb4   : > { %v394_v33 = vmul.f32 %v724_v29, %v393_v31  ;;  %v501_v36 = vsub.f32 1.0, %v500_v34 }
  0xb6   : > { %v395_v35 = vadd.f32 %v724_v29, %v394_v33  ;;  %v502_v40 = vmul.f32 %v726_v32, %v501_v36 }
  0xb8   : > { %v399_v39 = vsel %vm398_vm4, %v724_v29, %v395_v35  ;;  %v503_v45 = vadd.f32 %v726_v32, %v502_v40 }
  0xb9   : > { %v404_v42 = vsel %vm401_vm5, %v403_v41, %v399_v39 }
  0xba   : > { %v507_v49 = vsel %vm506_vm8, %v726_v32, %v503_v45  ;;  %v411_v59 = vmul.f32 %v409_v57, %v404_v42 }
  0xbb   : > { %v512_v50 = vsel %vm509_vm9, %v511_v48, %v507_v49 }
  0xbc   : > { %v519_v54 = vmul.f32 %v517_v53, %v512_v50 }
 0x115   : > { %v414_v44 = vpop.permute.xlu0 %413 }
 0x116   : > { %v416_v47 = vmul.f32 %v414_v44, %v404_v42 }
 0x118   : > { %418 = vrot.lane.b32.xlu1 %v416_v47, %s740_s25 }
 0x11d   : > { %v522_v51 = vpop.permute.xlu0 %521 }
 0x11e   : > { %v524_v52 = vmul.f32 %v522_v51, %v512_v50 }
 0x120   : > { %526 = vrot.lane.b32.xlu2 %v524_v52, %s740_s25 }
 0x128   : > { %430 = vperm.xlu2 %712, %v356_v63  }
 0x130   : > { %538 = vperm.xlu2 %712, %v465_v3  }
 0x17a   : > { %v527_v55 = vpop.permute.xlu2 %526 }
 0x17b   : > { %v529_v56 = vadd.f32 %v527_v55, %v519_v54 }
 0x17d   : > { %727 = vtanh.f32 %v529_v56 }
 0x182   : > { %v431_v16 = vpop.permute.xlu2 %430 }
 0x183   : > { %v728_v58 = vpop.eup %727 }
 0x184   : > { %532 = vrot.lane.b32.xlu1 %v728_v58, %s742_s30 }
 0x18a   : > { %v419_v60 = vpop.permute.xlu1 %418  ;;  %v539_v17 = vpop.permute.xlu2 %538 }
 0x18b   : > { %v421_v61 = vadd.f32 %v419_v60, %v411_v59 }
 0x18c   : > { %443 = vperm.xlu1 %713, %v440_v1  }
 0x18d   : > { %729 = vtanh.f32 %v421_v61 }
 0x193   : > { %v730_v62 = vpop.eup %729 }
 0x194   : > { %424 = vrot.lane.b32.xlu0 %v730_v62, %s742_s30  ;;  %551 = vperm.xlu1 %713, %v548_v4  }
 0x1f6   : > { %v533_v11 = vpop.permute.xlu1 %532 }
 0x1f7   : > { %v535_v12 = vmul.f32 %v533_v11, %v512_v50 }
 0x1fe   : > { %v444_v18 = vpop.permute.xlu1 %443 }
 0x1ff   : > { %v455_v19 = vmul.f32 %v444_v18, %v838_v6  ;;  %v446_v23 = vmul.f32 %v444_v18, %v829_v2 }
 0x206   : > { %v425_v8 = vpop.permute.xlu0 %424  ;;  %v552_v6 = vpop.permute.xlu1 %551 }
 0x207   : > { %v427_v9 = vmul.f32 %v425_v8, %v404_v42  ;;  %v554_v30 = vmul.f32 %v552_v6, %v836_v5  ;;  %v563_v35 = vmul.f32 %v552_v6, %v840_v7 }
 0x209   : > { %434 = vst [vmem:[#allocation1] ss:$4 sm:$0xff] %v427_v9 }
 0x210   : > { %v435_v10 = vld.sshfl [vmem:[#allocation1] sm:$0xff pattern:$0x73625140] }
 0x211   : > { %449 = vst [vmem:[#allocation1] ss:$4 sm:$0xff] %v421_v61  ;;  %436 = vrot.lane.b32.xlu0 %v435_v10, %s744_s11 }
 0x218   : > { %v450_v13 = vld.sshfl [vmem:[#allocation1] sm:$0xff pattern:$0x73625140] }
 0x219   : > { %451 = vrot.lane.b32.xlu2 %v450_v13, %s745_s14  ;;  %542 = vst [vmem:[#allocation1] ss:$4 sm:$0xff] %v535_v12 }
 0x220   : > { %v543_v14 = vld.sshfl [vmem:[#allocation1] sm:$0xff pattern:$0x73625140] }
 0x221   : > { %544 = vrot.lane.b32.xlu0 %v543_v14, %s744_s11  ;;  %557 = vst [vmem:[#allocation1] ss:$4 sm:$0xff] %v529_v56 }
 0x228   : > { %v558_v15 = vld.sshfl [vmem:[#allocation1] sm:$0xff pattern:$0x73625140] }
 0x229   : > { %559 = vrot.lane.b32.xlu0 %v558_v15, %s745_s14 }
 0x273   : > { %v452_v20 = vpop.permute.xlu2 %451 }
 0x274   : > { %v454_v21 = vmul.f32 %v452_v20, %v431_v16 }
 0x276   : > { %v456_v22 = vadd.f32 %v455_v19, %v454_v21 }
 0x278   : > { %459 = vst.msk [vmem:[#allocation3] sm:$0x3] %vm457_vm10, %v456_v22 }
 0x283   : > { %v437_v24 = vpop.permute.xlu0 %436 }
 0x284   : > { %v439_v25 = vmul.f32 %v437_v24, %v431_v16 }
 0x286   : > { %v447_v26 = vadd.f32 %v446_v23, %v439_v25 }
 0x288   : > { %458 = vst.msk [vmem:[#allocation2] sm:$0x3] %vm457_vm10, %v447_v26  ;;  %v460_v27 = vmul.f32 %v447_v26, %v431_v16 }
 0x28a   : > { %v461_v28 = vpack.c.bf16 %v460_v27, %v460_v27 }
 0x28c   : > { %463 = vst.msk [vmem:[%s339_s18] sm:$0x1] %vm462_vm11, %v461_v28 }
 0x293   : > { %v545_v29 = vpop.permute.xlu0 %544 }
 0x294   : > { %v547_v31 = vmul.f32 %v545_v29, %v539_v17 }
 0x296   : > { %v555_v2 = vadd.f32 %v554_v30, %v547_v31 }
 0x298   : > { %565 = vst.msk [vmem:[#allocation4] sm:$0x3] %vm457_vm10, %v555_v2  ;;  %v567_v32 = vmul.f32 %v555_v2, %v539_v17 }
 0x29a   : > { %v568_v33 = vpack.c.bf16 %v567_v32, %v567_v32 }
 0x29b   : > { %v560_v34 = vpop.permute.xlu0 %559 }
 0x29c   : > { %569 = vst.msk [vmem:[%s343_s28] sm:$0x1] %vm462_vm11, %v568_v33  ;;  %v562_v36 = vmul.f32 %v560_v34, %v539_v17 }
 0x29e   : > { %v564_v37 = vadd.f32 %v563_v35, %v562_v36 }
 0x2a0   : > { %566 = vst.msk [vmem:[#allocation5] sm:$0x3] %vm457_vm10, %v564_v37 }
 0x2a1 PF: > { %s18_s24 = sadd.s32 1, %s737_s24  }
 0x2a2   : > { %p15_p6 = scmp.ge.s32.totalorder %s18_s24, 10  }
 0x2a4   :  { %17 = sbr.rel (!%p15_p6) target bundleno = 1 (0x1), region = 99 }

// kernel: coattention_forward.21
= control target key start
LH: loop header
LB: loop body
LE: loop exit
PB: predicated region body
PF: predicated region fallthrough
CT: control target
= control target key end

     0   :  { %vm19_vm0 = vcmask 261120   ;;  %v146_v1 = vmov 0.0   ;;  %vm111_vm1 = vcmask 257024   ;;  %s204_s1 = inlined_call_operand.vmem [shape: bf16[32,32], index: 1, kind: input, shape index: {}]   ;;  %s205_s2 = inlined_call_operand.vmem [shape: f32[1,32], index: 2, kind: input, shape index: {}]   ;;  %s206_s0 = inlined_call_operand.vmem [shape: bf16[32,32], index: 0, kind: input, shape index: {}]   ;;  %s207_s3 = inlined_call_operand.vmem [shape: bf16[32,32], index: 3, kind: output, shape index: {}]  }
   0x1   :  { %v141_v0 = vld [vmem:[%s204_s1 + $0x8] sm:$0xff]  ;;  %20 = vst.msk [vmem:[#allocation2] sm:$0xff] %vm19_vm0, %v146_v1  ;;  %v140_v2 = vld [vmem:[%s204_s1] sm:$0xff] }
   0x2   :  { %21 = vst.msk [vmem:[#allocation2 + $0x8] sm:$0xff] %vm19_vm0, %v146_v1  ;;  %71 = vmatpush.bf16.msra.mxu0 %v141_v0  ;;  %142 = vmatpush.bf16.msra.mxu1 %v141_v0  ;;  %v138_v3 = vld [vmem:[%s206_s0] sm:$0xff]  ;;  %v139_v4 = vld [vmem:[%s206_s0 + $0x8] sm:$0xff] }
   0x3   :  { %22 = vst.msk [vmem:[#allocation2 + $0x10] sm:$0xff] %vm19_vm0, %v146_v1  ;;  %v145_v13 = vld [vmem:[%s205_s2] ss:$0 sm:$0xff] }
   0x4   :  { %23 = vst.msk [vmem:[#allocation2 + $0x18] sm:$0xff] %vm19_vm0, %v146_v1 }
   0x6   :  { %72 = vmatpush.bf16.msra.mxu0 %v140_v2  ;;  %143 = vmatpush.bf16.msra.mxu1 %v140_v2 }
   0x8   :  { %v24_v5 = vld [vmem:[#allocation2] sm:$0xff] }
   0x9   :  { %136 = vmatmul.msk.bf16.vlgmr.msra.gmra.mxu0 %vm19_vm0, %v138_v3  ;;  %137 = vmatmul.msk.bf16.vlgmr.msra.gmra.mxu1 %vm19_vm0, %v139_v4  ;;  %v25_v11 = vld [vmem:[#allocation2 + $0x8] sm:$0xff] }
   0xa   :  { %v26_v6 = vld [vmem:[#allocation2 + $0x10] sm:$0xff] }
   0xb   :  { %v27_v12 = vld [vmem:[#allocation2 + $0x18] sm:$0xff] }
  0x86   :  { %v74_v7 = vpop.f32.mrf.mxu0  ;;  %v79_v8 = vpop.f32.mrf.mxu1 }
  0x87   :  { %v84_v9 = vadd.f32 %v74_v7, %v24_v5  ;;  %v86_v10 = vadd.f32 %v79_v8, %v26_v6 }
  0x89   :  { %88 = vst.msk [vmem:[#allocation2] sm:$0xff] %vm19_vm0, %v84_v9 }
  0x8a   :  { %90 = vst.msk [vmem:[#allocation2 + $0x10] sm:$0xff] %vm19_vm0, %v86_v10 }
  0x8e   :  { %v76_v14 = vpop.f32.mrf.mxu0  ;;  %v81_v15 = vpop.f32.mrf.mxu1 }
  0x8f   :  { %v85_v16 = vadd.f32 %v76_v14, %v25_v11  ;;  %v87_v17 = vadd.f32 %v81_v15, %v27_v12 }
  0x90   :  { %v95_v18 = vld [vmem:[#allocation2] sm:$0xff] }
  0x91   :  { %v103_v19 = vadd.f32 %v145_v13, %v95_v18  ;;  %v97_v20 = vld [vmem:[#allocation2 + $0x10] sm:$0xff]  ;;  %89 = vst.msk [vmem:[#allocation2 + $0x8] sm:$0xff] %vm19_vm0, %v85_v16 }
  0x92   :  { %v105_v21 = vadd.f32 %v145_v13, %v97_v20  ;;  %91 = vst.msk [vmem:[#allocation2 + $0x18] sm:$0xff] %vm19_vm0, %v87_v17 }
  0x93   :  { %v107_v22 = vpack.c.bf16 %v103_v19, %v103_v19 }
  0x94   :  { %v109_v23 = vpack.c.bf16 %v105_v21, %v105_v21 }
  0x95   :  { %112 = vst.msk [vmem:[%s207_s3] sm:$0xf] %vm111_vm1, %v107_v22 }
  0x96   :  { %114 = vst.msk [vmem:[%s207_s3 + $0x8] sm:$0xf] %vm111_vm1, %v109_v23 }
  0x98   :  { %v96_v24 = vld [vmem:[#allocation2 + $0x8] sm:$0xff] }
  0x99   :  { %v104_v25 = vadd.f32 %v145_v13, %v96_v24  ;;  %v98_v26 = vld [vmem:[#allocation2 + $0x18] sm:$0xff] }
  0x9a   :  { %v106_v27 = vadd.f32 %v145_v13, %v98_v26 }
  0x9b   :  { %v108_v28 = vpack.c.bf16 %v104_v25, %v104_v25 }
  0x9c   :  { %v110_v29 = vpack.c.bf16 %v106_v27, %v106_v27 }
  0x9d   :  { %113 = vst.msk [vmem:[%s207_s3 + $0x4] sm:$0xf] %vm111_vm1, %v108_v28 }
  0x9e   :  { %115 = vst.msk [vmem:[%s207_s3 + $0xc] sm:$0xf] %vm111_vm1, %v110_v29 }

// kernel: coattention_forward.22
= control target key start
LH: loop header
LB: loop body
LE: loop exit
PB: predicated region body
PF: predicated region fallthrough
CT: control target
= control target key end

     0   :  { %s699_s27 = smov [#allocation3]   ;;  %s700_s28 = smov [#allocation4]   ;;  %s876_s0 = inlined_call_operand.vmem [shape: s32[2], index: 0, kind: input, shape index: {}]   ;;  %s877_s2 = inlined_call_operand.vmem [shape: bf16[2,8,32], index: 2, kind: input, shape index: {}]   ;;  %s878_s3 = inlined_call_operand.vmem [shape: bf16[2,8,32], index: 3, kind: input, shape index: {}]   ;;  %s879_s4 = inlined_call_operand.vmem [shape: bf16[2,8,32], index: 4, kind: output, shape index: {0}]   ;;  %s880_s5 = inlined_call_operand.hbm [shape: bf16[2,8,32], index: 5, kind: output, shape index: {1}]   ;;  %s881_s6 = inlined_call_operand.vmem [shape: bf16[2,8,32], index: 6, kind: output, shape index: {2}]   ;;  %s882_s1 = inlined_call_operand.vmem [shape: s32[2], index: 1, kind: input, shape index: {}]  }
   0x1   :  { %s13_s23 = sshll.u32 %s876_s0, 4  ;;  %s18_s26 = sshll.u32 %s882_s1, 4  ;;  %s14_s23 = int_to_ptr.vmem [resolvable:$true] %s13_s23  ;;  %s19_s26 = int_to_ptr.vmem [resolvable:$true] %s18_s26 }
   0x2   :  { %16 = dma.vmem_to_smem %s14_s23, 16, %s699_s27, [#allocation2] }
   0x3   :  { %21 = dma.vmem_to_smem %s19_s26, 16, %s700_s28, [#allocation2] }
   0x4   :  { %677 = dma.done.wait [#allocation2], 32 }
   0x5   :  { %678 = vsyncadd [#allocation2], 4294967264 }
   0x6   :  { %24 = sfence }
   0x7   :  { %25 = vsyncpa [#allocation6], 0 }
   0x8   :  { %27 = vsyncpa [#allocation6 + $0x1], 0  ;;  %s742_s29 = smov 0   ;;  %s744_s30 = smov 0  }
   0x9   :  { %s746_s0 = smov 0   ;;  %s748_s7 = smov 0  }
   0xa LB: > { %s763_s1 = sadd.s32 4294967295, %s697_s7   ;;  %s541_s8 = sadd.s32 4294967294, %s697_s7   ;;  %s697_s7 = sphi %s748_s7, %s892_s7   ;;  %s693_s0 = sphi %s746_s0, %s891_s0   ;;  %s689_s30 = sphi %s744_s30, %s890_s30   ;;  %s685_s29 = sphi %s742_s29, %s889_s29  }
   0xb   : > { %s767_s9 = sadd.s32 1, %s697_s7   ;;  %s118_s10 = sadd.s32 1, %s693_s0 }
   0xc   : > { %s115_s11 = ssub.s32 %s697_s7, %s767_s9  ;;  %p128_p0 = scmp.ne.s32.totalorder %s693_s0, %s689_s30 }
   0xd   : > { %p116_p1 = scmp.eq.s32.totalorder %s115_s11, 0  ;;  %p129_p2 = scmp.eq.s32.totalorder %s763_s1, 1 }
   0xe   : > { %p134_p3 = scmp.ne.s32.totalorder %s689_s30, %s685_s29  ;;  %p135_p4 = scmp.eq.s32.totalorder %s541_s8, 1 }
   0xf   : > { %s778_s12 = scalar_select %p116_p1, %s693_s0, %s118_s10  }
  0x10   : > { %p780_p5 = por %p129_p2, %p128_p0  ;;  %p784_p6 = por %p135_p4, %p134_p3 }
  0x11   : > { %p544_p7 = scmp.ge.s32.totalorder %s697_s7, 1  ;;  %p193_p8 = scmp.lt.s32.totalorder %s697_s7, 3 }
  0x13   : > { %p194_p9 = pnand %p544_p7, %p193_p8 }
  0x14   : > { %p230_p10 = scmp.lt.s32.totalorder (!%p194_p9), %s763_s1, 1  ;;  %s273_s23 = sld [smem:[#allocation3 + %s763_s1]] (!%p194_p9) }
  0x15   : > { %197 = sbr.rel (%p194_p9) target bundleno = 726 (0x2d6), region = 28  ;;  %s276_s24 = sld [smem:[#allocation4 + %s763_s1]] (!%p194_p9) }
  0x16   : > { %s221_s25 = sand.u32 (!%p194_p9), 1, %s689_s30   ;;  %s556_s28 = sshll.u32 (!%p194_p9), %s763_s1, 2 }
  0x17   : > { %s545_s26 = sshll.u32 (!%p194_p9), %s221_s25, 2  ;;  %s414_s11 = scalar_lea.hbm (!%p194_p9), %s880_s5, %s556_s28 }
  0x18   : > { %s223_s27 = scalar_lea.vmem (!%p194_p9), [#allocation5], %s545_s26  ;;  %s418_s17 = sshll.u32 (!%p194_p9), %s414_s11, 4  ;;  %s419_s17 = int_to_ptr.hbm [resolvable:$true] %s418_s17 }
  0x19   : > { %s397_s18 = scalar_lea.sflag (!%p194_p9), [#allocation6], %s221_s25 }
  0x1a   : > { %s231_s15 = scalar_select %p230_p10, %s763_s1, 1  ;;  %vm249_vm0 = vcmask 261120   ;;  %v269_v3 = vlaneseq  ;;  %v274_v6 = vstv %s273_s23  ;;  %vm282_vm4 = vcmask 64512  }
  0x1b   : > { %v277_v7 = vstv %s276_s24  ;;  %vm335_vm5 = vcmask 1043456   ;;  %vm387_vm6 = vcmask 257024   ;;  %s653_s1 = scalar_lea.hbm %s880_s5, 8 }
  0x1c   : > { %s792_s16 = sshll.u32 %s231_s15, 2  ;;  %v270_v4 = vshrl.u32 %v269_v3, 7  ;;  %v272_v5 = vand.u32 127, %v269_v3  ;;  %s416_s15 = sshll.u32 %s223_s27, 4  ;;  %s417_s15 = int_to_ptr.vmem [resolvable:$true] %s416_s15 }
  0x1d   : > { %s237_s19 = scalar_lea.vmem %s878_s3, %s792_s16  ;;  %s233_s22 = scalar_lea.vmem %s877_s2, %s792_s16 }
  0x1e   : > { %v798_v0 = vld [vmem:[%s237_s19] sm:$0xf]  ;;  %vm807_vm1 = vcmp.lt.s32.totalorder %v270_v4, %v274_v6  ;;  %vm811_vm2 = vcmp.lt.s32.totalorder %v272_v5, %v277_v7  ;;  %s647_s19 = sshra.s32 %s419_s17, 4  ;;  %s648_s19 = int_to_ptr.hbm [resolvable:$true] %s647_s19 }
  0x1f   : > { %v254_v1 = vsel %vm249_vm0, %v798_v0, 0  ;;  %v247_v2 = vld [vmem:[%s233_s22] sm:$0xf]  ;;  %vm279_vm3 = vmand %vm807_vm1, %vm811_vm2  ;;  %v355_v46 = vsel %vm335_vm5, %v798_v0, 0  ;;  %s649_s20 = scalar_lea.hbm %s648_s19, 4  ;;  %p654_p0 = scmp.lt.s32.totalorder %s648_s19, %s880_s5 }
  0x20   : > { %263 = vmatpush.bf16.xpose.msra.mxu0 %v254_v1  ;;  %v336_v35 = vsel %vm335_vm5, %v247_v2, 0  ;;  %364 = vmatpush.bf16.msra.mxu2 %v355_v46  ;;  %p650_p11 = scmp.ne.s32.totalorder %s648_s19, %s649_s20  ;;  %p655_p1 = scmp.lt.s32.totalorder %s653_s1, %s649_s20 }
  0x21   : > { %345 = vmatpush.bf16.msra.mxu1 %v336_v35 }
  0x22   : > { %p651_p12 = pnand %p650_p11, %p780_p5  ;;  %p656_p2 = por %p655_p1, %p654_p0 }
  0x24   : > { %p652_p13 = pneg %p651_p12 }
  0x26   : > { %p657_p3 = pnand %p656_p2, %p652_p13 }
  0x27   : > { %550 = vmatmul.msk.bf16.vlgmr.msra.gmra.mxu0 %vm249_vm0, %v247_v2 }
  0xa4   : > { %v265_v10 = vpop.f32.mrf.mxu0 }
  0xa5   : > { %v551_v11 = vadd.f32 -1e+09, %v265_v10 }
  0xa7   : > { %v281_v12 = vsel %vm279_vm3, %v265_v10, %v551_v11 }
  0xa8   : > { %v283_v13 = vsel %vm282_vm4, %v281_v12, -inf }
  0xa9   : > { %v284_v14 = vrot.slane %v283_v13, 4 }
  0xab   : > { %v285_v15 = vmax.f32 %v283_v13, %v284_v14 }
  0xac   : > { %v267_v16 = vpop.f32.mrf.mxu0 }
  0xad   : > { %v286_v17 = vrot.slane %v285_v15, 2 }
  0xaf   : > { %v287_v18 = vmax.f32 %v285_v15, %v286_v17 }
  0xb1   : > { %v288_v19 = vrot.slane %v287_v18, 1 }
  0xb3   : > { %v289_v20 = vmax.f32 %v287_v18, %v288_v19 }
  0xb5   : > { %v290_v21 = vsub.f32 %v281_v12, %v289_v20 }
  0xb7   : > { %v291_v22 = vmul.f32 1.442695, %v290_v21 }
  0xb9   : > { %601 = vpow2.f32 %v291_v22 }
  0xbf   : > { %v602_v23 = vpop.eup %601 }
  0xc0   : > { %v293_v24 = vsel %vm282_vm4, %v602_v23, 0.0 }
  0xc1   : > { %v294_v25 = vrot.slane %v293_v24, 4 }
  0xc3   : > { %v295_v26 = vadd.f32 %v294_v25, %v293_v24 }
  0xc5   : > { %v296_v27 = vrot.slane %v295_v26, 2 }
  0xc7   : > { %v297_v28 = vadd.f32 %v296_v27, %v295_v26 }
  0xc9   : > { %v298_v29 = vrot.slane %v297_v28, 1 }
  0xcb   : > { %v299_v30 = vadd.f32 %v298_v29, %v297_v28 }
  0xcd   : > { %603 = vrcp.f32 %v299_v30 }
  0xd3   : > { %v604_v31 = vpop.eup %603 }
  0xd4   : > { %v301_v32 = vmul.f32 %v604_v31, %v602_v23 }
  0xd6   : > { %v302_v33 = vsel %vm811_vm2, %v301_v32, 0.0 }
  0xd7   : > { %v314_v34 = vpack.c.bf16 %v302_v33, %v302_v33 }
  0xd9   : > { %316 = vxpose.xlu0.c.b16.start.end [1/1] (short) (narrow) %v314_v34, 16 }
 0x14a   : > { %303 = vmax.xlane.f32.xlu0 %v283_v13 }
 0x185   : > { %v324_v36 = vpop.trf.xlu0 }
 0x186   : > { %552 = vmatmul.msk.bf16.vlgmr.msra.gmra.mxu1 %vm282_vm4, %v324_v36 }
 0x1bd   : > { %v304_v37 = vpop.xlane.xlu0 %303 }
 0x1be   : > { %v305_v38 = vsub.f32 %v281_v12, %v304_v37 }
 0x1c0   : > { %v306_v39 = vmul.f32 1.442695, %v305_v38 }
 0x1c2   : > { %605 = vpow2.f32 %v306_v39 }
 0x1c8   : > { %v606_v40 = vpop.eup %605 }
 0x1c9   : > { %v308_v41 = vsel %vm282_vm4, %v606_v40, 0.0 }
 0x1ca   : > { %309 = vadd.xlane.f32.xlu1 %v308_v41 }
 0x203   : > { %v347_v42 = vpop.f32.mrf.mxu1 }
 0x204   : > { %v351_v43 = vpack.c.bf16 %v347_v42, %v347_v42 }
 0x206   : > { %v371_v44 = vsel %vm335_vm5, %v351_v43, 0  ;;  %389 = vst.msk [vmem:[%s223_s27] sm:$0xf] %vm387_vm6, %v351_v43 }
 0x207   : > { %380 = vmatpush.bf16.msra.mxu3 %v371_v44 }
 0x20b   : > { %v349_v45 = vpop.f32.mrf.mxu1 }
 0x23d   : > { %v310_v47 = vpop.xlane.xlu1 %309 }
 0x23e   : > { %607 = vrcp.f32 %v310_v47 }
 0x244   : > { %v608_v48 = vpop.eup %607 }
 0x245   : > { %v312_v49 = vmul.f32 %v608_v48, %v606_v40 }
 0x247   : > { %v313_v50 = vsel %vm807_vm1, %v312_v49, 0.0 }
 0x248   : > { %v315_v51 = vpack.c.bf16 %v313_v50, %v313_v50 }
 0x24a   : > { %553 = vmatmul.msk.bf16.vlgmr.msra.gmra.mxu2 %vm282_vm4, %v315_v51  ;;  %554 = vmatmul.msk.bf16.vlgmr.msra.gmra.mxu3 %vm282_vm4, %v315_v51 }
 0x24b   : > { %660 = shalt.err (!%p657_p3)
}
 0x24c   : > { %559 = dma.vmem_to_hbm [thread:$0]  (%p780_p5), %s417_s15, 64, %s419_s17, %s397_s18  }
 0x24d   : > { %s241_s27 = scalar_lea.vmem %s879_s4, %s792_s16  ;;  %s245_s10 = scalar_lea.vmem %s881_s6, %s792_s16 }
 0x2cd   : > { %v366_v52 = vpop.f32.mrf.mxu2  ;;  %v382_v53 = vpop.f32.mrf.mxu3 }
 0x2ce   : > { %v386_v54 = vpack.c.bf16 %v366_v52, %v366_v52  ;;  %v390_v55 = vpack.c.bf16 %v382_v53, %v382_v53 }
 0x2d0   : > { %388 = vst.msk [vmem:[%s241_s27] sm:$0xf] %vm387_vm6, %v386_v54 }
 0x2d1   : > { %391 = vst.msk [vmem:[%s245_s10] sm:$0xf] %vm387_vm6, %v390_v55 }
 0x2d5   : > { %v368_v56 = vpop.f32.mrf.mxu2  ;;  %v384_v57 = vpop.f32.mrf.mxu3 }
 0x2d6 PF: > { %p565_p4 = scmp.ge.s32.totalorder %s697_s7, 2  ;;  %s440_s13 = sand.u32 1, %s685_s29  }
 0x2d7   : > { %s441_s11 = scalar_lea.sflag [#allocation6], %s440_s13 }
 0x2d8   : > { %p562_p5 = pnand %p565_p4, %p784_p6 }
 0x2da   : > { %p563_p7 = pneg %p562_p5 }
 0x2dc   : > { %680 = dma.done.wait (%p563_p7), %s441_s11, 64  }
 0x2dd   : > { %682 = vsyncadd (%p563_p7), %s441_s11, 4294967232  ;;  %p30_p8 = scmp.ge.s32.totalorder %s767_s9, 4   ;;  %s889_s29 = smov %s689_s30 }
 0x2de   : > { %s890_s30 = smov %s693_s0  ;;  %s891_s0 = smov %s778_s12 }
 0x2df   : > { %s892_s7 = smov %s767_s9  ;;  %32 = sbr.rel (!%p30_p8) target bundleno = 10 (0xa), region = 90 }
 0x2e4   :  { %454 = vsyncpa [#allocation6], 1 }
 0x2e5   :  { %456 = vsyncpa [#allocation6 + $0x1], 1 }

// kernel: coattention_forward.23
= control target key start
LH: loop header
LB: loop body
LE: loop exit
PB: predicated region body
PF: predicated region fallthrough
CT: control target
= control target key end

     0   :  { %vm130_vm0 = vcmask 523264   ;;  %s336_s1 = inlined_call_operand.vmem [shape: bf16[192,128], index: 1, kind: input, shape index: {}]   ;;  %s337_s0 = inlined_call_operand.vmem [shape: bf16[16,192], index: 0, kind: input, shape index: {}]   ;;  %s338_s2 = inlined_call_operand.vmem [shape: f32[1,128], index: 2, kind: input, shape index: {}]   ;;  %s339_s3 = inlined_call_operand.vmem [shape: bf16[16,128], index: 3, kind: output, shape index: {}]  }
   0x1   :  { %v251_v0 = vld [vmem:[%s336_s1 + $0x38] sm:$0xff]  ;;  %v250_v2 = vld [vmem:[%s336_s1 + $0x30] sm:$0xff]  ;;  %v249_v4 = vld [vmem:[%s336_s1 + $0x28] sm:$0xff] }
   0x2   :  { %v255_v1 = vld [vmem:[%s336_s1 + $0x58] sm:$0xff]  ;;  %134 = vmatpush.bf16.msra.mxu0 %v251_v0  ;;  %v254_v3 = vld [vmem:[%s336_s1 + $0x50] sm:$0xff]  ;;  %v253_v5 = vld [vmem:[%s336_s1 + $0x48] sm:$0xff] }
   0x3   :  { %152 = vmatpush.bf16.msra.mxu1 %v255_v1  ;;  %v248_v6 = vld [vmem:[%s336_s1 + $0x20] sm:$0xff]  ;;  %v189_v9 = vld [vmem:[%s337_s0 + $0x8] sm:$0xf0]  ;;  %v247_v10 = vld [vmem:[%s336_s1 + $0x18] sm:$0xff] }
   0x4   :  { %v252_v7 = vld [vmem:[%s336_s1 + $0x40] sm:$0xff]  ;;  %v246_v12 = vld [vmem:[%s336_s1 + $0x10] sm:$0xff]  ;;  %v245_v13 = vld [vmem:[%s336_s1 + $0x8] sm:$0xff] }
   0x5   :  { %v242_v8 = vld [vmem:[%s337_s0 + $0x4] sm:$0xf]  ;;  %v187_v15 = vld [vmem:[%s337_s0] sm:$0xf]  ;;  %v243_v16 = vld [vmem:[%s337_s0 + $0x4] sm:$0xf0] }
   0x6   :  { %135 = vmatpush.bf16.msra.mxu0 %v250_v2  ;;  %v192_v11 = vor.u32 %v242_v8, %v189_v9  ;;  %v244_v14 = vld [vmem:[%s336_s1] sm:$0xff]  ;;  %v188_v17 = vor.u32 %v243_v16, %v187_v15 }
   0x7   :  { %153 = vmatpush.bf16.msra.mxu1 %v254_v3  ;;  %v261_v21 = vld [vmem:[%s338_s2] ss:$0 sm:$0xff] }
   0xa   :  { %136 = vmatpush.bf16.msra.mxu0 %v249_v4 }
   0xb   :  { %154 = vmatpush.bf16.msra.mxu1 %v253_v5 }
   0xe   :  { %137 = vmatpush.bf16.msra.mxu0 %v248_v6 }
   0xf   :  { %155 = vmatpush.bf16.msra.mxu1 %v252_v7 }
  0x12   :  { %138 = vmatpush.bf16.msra.mxu0 %v247_v10  ;;  %241 = vmatmul.msk.bf16.vlgmr.msra.gmra.mxu1 %vm130_vm0, %v192_v11 }
  0x16   :  { %139 = vmatpush.bf16.msra.mxu0 %v246_v12 }
  0x1a   :  { %140 = vmatpush.bf16.msra.mxu0 %v245_v13 }
  0x1e   :  { %141 = vmatpush.bf16.msra.mxu0 %v244_v14 }
  0x21   :  { %142 = vmatmul.bf16.vlgmr.msra.gmra.mxu0 %v188_v17 }
  0x8f   :  { %v157_v18 = vpop.f32.mrf.mxu1 }
  0x97   :  { %v159_v22 = vpop.f32.mrf.mxu1 }
  0x9e   :  { %v143_v19 = vpop.f32.mrf.mxu0 }
  0x9f   :  { %v158_v20 = vadd.f32 %v157_v18, %v143_v19 }
  0xa1   :  { %v175_v25 = vadd.f32 %v261_v21, %v158_v20 }
  0xa6   :  { %v145_v23 = vpop.f32.mrf.mxu0 }
  0xa7   :  { %v160_v24 = vadd.f32 %v159_v22, %v145_v23 }
  0xa9   :  { %v176_v26 = vadd.f32 %v261_v21, %v160_v24 }
  0xab   :  { %v259_v27 = vpack.c.bf16 %v176_v26, %v175_v25 }
  0xad   :  { %260 = vst [vmem:[%s339_s3] sm:$0xff] %v259_v27  }

// kernel: coattention_forward.25
= control target key start
LH: loop header
LB: loop body
LE: loop exit
PB: predicated region body
PF: predicated region fallthrough
CT: control target
= control target key end

     0   :  { %vm46_vm0 = vcmask 261120   ;;  %s144_s1 = inlined_call_operand.vmem [shape: bf16[32,128], index: 1, kind: input, shape index: {}]   ;;  %s145_s2 = inlined_call_operand.vmem [shape: f32[1,128], index: 2, kind: input, shape index: {}]   ;;  %s146_s0 = inlined_call_operand.vmem [shape: bf16[16,32], index: 0, kind: input, shape index: {}]   ;;  %s147_s3 = inlined_call_operand.vmem [shape: bf16[16,128], index: 3, kind: output, shape index: {}]  }
   0x1   :  { %v102_v0 = vld [vmem:[%s144_s1 + $0x8] sm:$0xff]  ;;  %v101_v1 = vld [vmem:[%s144_s1] sm:$0xff] }
   0x2   :  { %56 = vmatpush.bf16.msra.mxu0 %v102_v0  ;;  %v100_v2 = vld [vmem:[%s146_s0] sm:$0xff] }
   0x3   :  { %v108_v4 = vld [vmem:[%s145_s2] ss:$0 sm:$0xff] }
   0x6   :  { %57 = vmatpush.bf16.msra.mxu0 %v101_v1 }
   0x9   :  { %99 = vmatmul.msk.bf16.vlgmr.msra.gmra.mxu0 %vm46_vm0, %v100_v2 }
  0x86   :  { %v59_v3 = vpop.f32.mrf.mxu0 }
  0x87   :  { %v77_v6 = vadd.f32 %v108_v4, %v59_v3 }
  0x8e   :  { %v61_v5 = vpop.f32.mrf.mxu0 }
  0x8f   :  { %v78_v7 = vadd.f32 %v108_v4, %v61_v5 }
  0x91   :  { %v106_v8 = vpack.c.bf16 %v78_v7, %v77_v6 }
  0x93   :  { %107 = vst [vmem:[%s147_s3] sm:$0xff] %v106_v8  }

// kernel: coattention_forward.27
= control target key start
LH: loop header
LB: loop body
LE: loop exit
PB: predicated region body
PF: predicated region fallthrough
CT: control target
= control target key end

     0   :  { %vm20_vm0 = vcmask 261120   ;;  %v148_v1 = vmov 0.0   ;;  %s194_s0 = inlined_call_operand.vmem [shape: bf16[16,32], index: 0, kind: input, shape index: {}]   ;;  %s195_s1 = inlined_call_operand.vmem [shape: bf16[32,32], index: 1, kind: input, shape index: {}]   ;;  %s196_s2 = inlined_call_operand.vmem [shape: f32[1,32], index: 2, kind: input, shape index: {}]   ;;  %s197_s3 = inlined_call_operand.hbm [shape: f32[16,32], index: 3, kind: output, shape index: {}]  }
   0x1   :  { %v116_v0 = vld [vmem:[%s195_s1 + $0x8] sm:$0xff]  ;;  %21 = vst.msk [vmem:[#allocation2] sm:$0xff] %vm20_vm0, %v148_v1 }
   0x2   :  { %8 = vsyncpa [#allocation4], 0  ;;  %58 = vmatpush.bf16.msra.mxu0 %v116_v0  ;;  %v115_v2 = vld [vmem:[%s195_s1] sm:$0xff]  ;;  %22 = vst.msk [vmem:[#allocation2 + $0x8] sm:$0xff] %vm20_vm0, %v148_v1  ;;  %s89_s22 = sshll.u32 %s197_s3, 4  ;;  %s151_s23 = smov 8   ;;  %s90_s22 = int_to_ptr.hbm [resolvable:$true] %s89_s22 }
   0x3   :  { %v114_v3 = vld [vmem:[%s194_s0] sm:$0xff]  ;;  %s149_s0 = smov [#allocation3]  }
   0x4   :  { %v121_v8 = vld [vmem:[%s196_s2] ss:$0 sm:$0xff]  ;;  %s87_s1 = sshll.u32 %s149_s0, 4  ;;  %s150_s2 = smov 128   ;;  %s88_s1 = int_to_ptr.vmem [resolvable:$true] %s87_s1 }
   0x6   :  { %59 = vmatpush.bf16.msra.mxu0 %v115_v2 }
   0x8   :  { %v23_v4 = vld [vmem:[#allocation2] sm:$0xff] }
   0x9   :  { %113 = vmatmul.msk.bf16.vlgmr.msra.gmra.mxu0 %vm20_vm0, %v114_v3  ;;  %v24_v7 = vld [vmem:[#allocation2 + $0x8] sm:$0xff] }
  0x86   :  { %v61_v5 = vpop.f32.mrf.mxu0 }
  0x87   :  { %v66_v6 = vadd.f32 %v61_v5, %v23_v4 }
  0x89   :  { %68 = vst.msk [vmem:[#allocation2] sm:$0xff] %vm20_vm0, %v66_v6 }
  0x8e   :  { %v63_v9 = vpop.f32.mrf.mxu0 }
  0x8f   :  { %v67_v10 = vadd.f32 %v63_v9, %v24_v7 }
  0x90   :  { %v73_v11 = vld [vmem:[#allocation2] sm:$0xff] }
  0x91   :  { %69 = vst.msk [vmem:[#allocation2 + $0x8] sm:$0xff] %vm20_vm0, %v67_v10  ;;  %v79_v12 = vadd.f32 %v121_v8, %v73_v11 }
  0x93   :  { %81 = vst.msk [vmem:[#allocation3] sm:$0xff] %vm20_vm0, %v79_v12 }
  0x98   :  { %v74_v13 = vld [vmem:[#allocation2 + $0x8] sm:$0xff] }
  0x99   :  { %v80_v14 = vadd.f32 %v121_v8, %v74_v13 }
  0x9b   :  { %82 = vst.msk [vmem:[#allocation3 + $0x8] sm:$0xff] %vm20_vm0, %v80_v14 }
  0x9c   :  { %95 = dma.vmem_to_hbm [thread:$0]  %s88_s1, 256, %s90_s22, [#allocation4], %s150_s2, %s150_s2, %s151_s23  }
  0x9d   :  { %146 = dma.done.wait [#allocation4], 256  }
  0x9e   :  { %147 = vsyncadd [#allocation4], 4294967040 }
  0x9f   :  { %100 = vsyncpa [#allocation4], 1 }

</bundles_post_ra>
